<compile_context>
chip_gen: v5e
topology: v5e:2x2
jax: 0.10.0
libtpu: 0.0.40
codegen_flags: <defaults>
</compile_context>

<pallas_src>
import functools

import jax
import jax.numpy as jnp
from jax.experimental import pallas as pl
from jax.experimental.pallas import tpu as pltpu


# ----------------------------- in-kernel helpers -----------------------------

def _layernorm(v, eps):
    mu = jnp.mean(v, axis=-1, keepdims=True)
    vc = v - mu
    var = jnp.mean(vc * vc, axis=-1, keepdims=True)
    return vc * jax.lax.rsqrt(var + eps)


# --------------------------------- fused kernel -------------------------------

def _fused_kernel(lat0_ref, lnx_ref, mod_ref,
                  qw_ref, kw_ref, vw_ref, qb_ref, kb_ref, vb_ref,
                  ow_ref, ob_ref, fcw_ref, fcb_ref, pjw_ref, pjb_ref,
                  pow_ref, pob_ref, pg_ref, pbeta_ref,
                  out_ref, lat_acc, *, n_heads, out_dim):
    blk = pl.program_id(1)
    n_blk = pl.num_programs(1)

    TB, L, W = lat0_ref.shape
    S = lnx_ref.shape[1]
    M = L + S
    Dh = W // n_heads
    att_scale = float(Dh) ** -0.5
    bf16 = jnp.bfloat16
    f32 = jnp.float32

    # ---- init the resident latent accumulator at the first block of the tile ----
    @pl.when(blk == 0)
    def _():
        lat_acc[...] = lat0_ref[...].reshape(TB * L, W)

    lat = lat_acc[...]                                    # (TB*L, W) f32

    # Pre-computed AdaLayerNorm modulation rows, per batch element:
    #   [shift1, scale1, shift2, scale2, shift_ff, scale_ff]
    mod = mod_ref[0]                                      # (TB, 6, W) f32
    shift1, scale1 = mod[:, 0:1, :], mod[:, 1:2, :]       # (TB, 1, W)
    shift2, scale2 = mod[:, 2:3, :], mod[:, 3:4, :]
    shiftf, scalef = mod[:, 4:5, :], mod[:, 5:6, :]

    # ---- AdaLayerNorm ln_1 (latents) / ln_2 (x; LN(x) hoisted host-side) ----
    lat3 = lat.reshape(TB, L, W)
    nl3 = _layernorm(lat3, 1e-6) * (1.0 + scale1) + shift1        # (TB, L, W)
    nx3 = lnx_ref[...].astype(f32) * (1.0 + scale2) + shift2      # (TB, S, W)

    # Merged KV operand: concat([normed_latents, normed_x]) along the seq axis.
    kv_b = jnp.concatenate([nl3, nx3], axis=1).reshape(TB * M, W).astype(bf16)
    nl_b = nl3.reshape(TB * L, W).astype(bf16)

    # ---- QKV projections, flattened over the batch tile (MXU, f32 accum) ----
    q = jnp.dot(nl_b, qw_ref[0], preferred_element_type=f32) + qb_ref[0]
    k = jnp.dot(kv_b, kw_ref[0], preferred_element_type=f32) + kb_ref[0]
    v = jnp.dot(kv_b, vw_ref[0], preferred_element_type=f32) + vb_ref[0]
    q3 = q.reshape(TB, L, W)
    k3 = k.reshape(TB, M, W)
    v3 = v.reshape(TB, M, W)

    # ---- multi-head attention: joint softmax over the merged (L+S) KV ----
    oh_parts = []
    for h in range(n_heads):                              # static head loop
        lo = h * Dh
        qh = q3[..., lo:lo + Dh].astype(bf16)             # (TB, L, Dh)
        kh = k3[..., lo:lo + Dh].astype(bf16)             # (TB, M, Dh)
        vh = v3[..., lo:lo + Dh].astype(bf16)
        s = jnp.einsum('bld,bmd->blm', qh, kh,
                       preferred_element_type=f32) * att_scale
        m = jnp.max(s, axis=-1, keepdims=True)
        p = jnp.exp(s - m)
        inv = pl.reciprocal(jnp.sum(p, axis=-1, keepdims=True), approx=True)
        oh = jnp.einsum('blm,bmd->bld', p.astype(bf16), vh,
                        preferred_element_type=f32)
        oh_parts.append(oh * inv)      # normalize after PV (smaller VPU multiply)

    o_cat = jnp.concatenate(oh_parts, axis=-1)            # (TB, L, W) f32
    attn = jnp.dot(o_cat.reshape(TB * L, W).astype(bf16), ow_ref[0],
                   preferred_element_type=f32) + ob_ref[0]
    lat = lat + attn

    # ---- MLP with AdaLayerNorm ln_ff and SquaredReLU ----
    nf3 = _layernorm(lat.reshape(TB, L, W), 1e-6) * (1.0 + scalef) + shiftf
    h1 = jnp.dot(nf3.reshape(TB * L, W).astype(bf16), fcw_ref[0],
                 preferred_element_type=f32) + fcb_ref[0]
    h1 = jnp.square(jnp.maximum(h1, 0.0))
    lat = lat + jnp.dot(h1.astype(bf16), pjw_ref[0],
                        preferred_element_type=f32) + pjb_ref[0]
    lat_acc[...] = lat

    # ---- final proj_out + affine LayerNorm (lane-padded, exactly masked) ----
    @pl.when(blk == n_blk - 1)
    def _():
        O_pad = pow_ref.shape[-1]
        y = jnp.dot(lat.astype(bf16), pow_ref[...],
                    preferred_element_type=f32) + pob_ref[...]    # (TB*L, O_pad)
        lane = jax.lax.broadcasted_iota(jnp.int32, (TB * L, O_pad), 1)
        valid = lane < out_dim
        mean = jnp.sum(jnp.where(valid, y, 0.0), axis=-1, keepdims=True) / out_dim
        yc = jnp.where(valid, y - mean, 0.0)
        var = jnp.sum(yc * yc, axis=-1, keepdims=True) / out_dim
        ynorm = yc * jax.lax.rsqrt(var + 1e-5)
        out_ref[...] = (ynorm * pg_ref[...] + pbeta_ref[...]).reshape(TB, L, O_pad)


# ------------------------------ pallas wrapper --------------------------------

def perceiver_resampler_forward(x, temb, params, *, heads, batch_tile=None):
    """Full PerceiverResampler.forward (input_dim and output_dim set)."""
    B, S, _ = x.shape
    L, W = params['latents'].shape
    nb = len(params['blocks'])
    O = params['proj_out_w'].shape[0]
    assert W % heads == 0

    # Batch tiling: per-block weights are streamed once per batch tile, so a
    # larger TB amortizes more.  Default keeps >= 2 parallel tiles when B is
    # even so both v7x TensorCores get work; on single-TC chips (v5e/v6e) pass
    # batch_tile=B for maximal weight-stream amortization.
    if batch_tile is None:
        batch_tile = B // 2 if (B >= 2 and B % 2 == 0) else B
    TB = batch_tile
    assert B % TB == 0, "batch must divide evenly into batch tiles"
    n_bt = B // TB

    O_pad = ((O + 127) // 128) * 128
    bf16 = jnp.bfloat16

    # ---- one-time XLA prep: silu(t), latent init, proj_in, LN(x), AdaLN mod ----
    t_silu = jax.nn.silu(temb)                                        # (B, 1, T)
    lat0 = params['latents'][None] + (t_silu @ params['ta_w'].T + params['ta_b'])
    xp = x @ params['proj_in_w'].T + params['proj_in_b']              # (B, S, W)
    mu = jnp.mean(xp, axis=-1, keepdims=True)
    var = jnp.mean(jnp.square(xp - mu), axis=-1, keepdims=True)
    lnx = ((xp - mu) * jax.lax.rsqrt(var + 1e-6)).astype(bf16)        # LN(x), bf16

    t2 = t_silu[:, 0]                                                 # (B, T)

    def mk_mod(bp):
        e1 = t2 @ bp['ln1_w'].T + bp['ln1_b']
        e2 = t2 @ bp['ln2_w'].T + bp['ln2_b']
        ef = t2 @ bp['lnff_w'].T + bp['lnff_b']
        return jnp.stack([e1[:, :W], e1[:, W:], e2[:, :W], e2[:, W:],
                          ef[:, :W], ef[:, W:]], axis=1)              # (B, 6, W)

    mod = jnp.stack([mk_mod(bp) for bp in params['blocks']], axis=0)  # (nb, B, 6, W)

    stack = lambda f: jnp.stack([f(bp) for bp in params['blocks']], axis=0)
    qw = stack(lambda bp: bp['in_w'][:W].T).astype(bf16)              # (nb, W, W)
    kw = stack(lambda bp: bp['in_w'][W:2 * W].T).astype(bf16)
    vw = stack(lambda bp: bp['in_w'][2 * W:].T).astype(bf16)
    qb = stack(lambda bp: bp['in_b'][:W]).reshape(nb, 1, W)
    kb = stack(lambda bp: bp['in_b'][W:2 * W]).reshape(nb, 1, W)
    vb = stack(lambda bp: bp['in_b'][2 * W:]).reshape(nb, 1, W)
    ow = stack(lambda bp: bp['out_w'].T).astype(bf16)                 # (nb, W, W)
    ob = stack(lambda bp: bp['out_b']).reshape(nb, 1, W)
    fcw = stack(lambda bp: bp['fc_w'].T).astype(bf16)                 # (nb, W, 4W)
    fcb = stack(lambda bp: bp['fc_b']).reshape(nb, 1, 4 * W)
    pjw = stack(lambda bp: bp['pj_w'].T).astype(bf16)                 # (nb, 4W, W)
    pjb = stack(lambda bp: bp['pj_b']).reshape(nb, 1, W)

    # Lane-dense (128-padded) proj_out parameters; the pad is exactly masked in
    # the kernel's final LayerNorm and sliced off after the pallas_call.
    def pad_lane(v2d):
        return jnp.zeros((v2d.shape[0], O_pad), v2d.dtype).at[:, :O].set(v2d)

    pow_ = pad_lane(params['proj_out_w'].T).astype(bf16)              # (W, O_pad)
    pob = pad_lane(params['proj_out_b'].reshape(1, O))
    pg = pad_lane(params['proj_out_g'].reshape(1, O))
    pbeta = pad_lane(params['proj_out_beta'].reshape(1, O))

    # ---- BlockSpecs: grid = (batch tiles, blocks) ----
    def per_tile(shape):
        n = len(shape) - 1
        return pl.BlockSpec((TB,) + shape[1:], lambda bt, k, _n=n: (bt,) + (0,) * _n)

    def per_block(shape):
        n = len(shape) - 1
        return pl.BlockSpec((1,) + shape[1:], lambda bt, k, _n=n: (k,) + (0,) * _n)

    def const(shape):
        n = len(shape)
        return pl.BlockSpec(shape, lambda bt, k, _n=n: (0,) * _n)

    in_specs = [
        per_tile(lat0.shape),                                         # lat0
        per_tile(lnx.shape),                                          # LN(x), bf16
        pl.BlockSpec((1, TB, 6, W), lambda bt, k: (k, bt, 0, 0)),     # AdaLN mod
        per_block(qw.shape), per_block(kw.shape), per_block(vw.shape),
        per_block(qb.shape), per_block(kb.shape), per_block(vb.shape),
        per_block(ow.shape), per_block(ob.shape),
        per_block(fcw.shape), per_block(fcb.shape),
        per_block(pjw.shape), per_block(pjb.shape),
        const(pow_.shape), const(pob.shape), const(pg.shape), const(pbeta.shape),
    ]

    # ---- VMEM budget: double-buffered block weights + resident tiles + scratch ----
    def nbytes(a):
        return a.size * a.dtype.itemsize

    blk_w_bytes = sum(nbytes(a) for a in
                      (qw, kw, vw, qb, kb, vb, ow, ob, fcw, fcb, pjw, pjb)) // nb
    resident_bytes = (TB * L * W * 4 + TB * S * W * 2 + TB * 6 * W * 4
                      + TB * L * O_pad * 4
                      + nbytes(pow_) + nbytes(pob) + nbytes(pg) + nbytes(pbeta))
    scratch_bytes = TB * L * W * 4
    act_bytes = 6 * TB * L * 4 * W * 4     # headroom for h1 / kv / score temporaries
    vmem_limit = int(min(120 * 2 ** 20,
                         max(32 * 2 ** 20,
                             2 * blk_w_bytes + 2 * resident_bytes
                             + scratch_bytes + act_bytes)))

    kernel = functools.partial(_fused_kernel, n_heads=heads, out_dim=O)
    out_pad = pl.pallas_call(
        kernel,
        out_shape=jax.ShapeDtypeStruct((B, L, O_pad), jnp.float32),
        grid=(n_bt, nb),
        in_specs=in_specs,
        out_specs=pl.BlockSpec((TB, L, O_pad), lambda bt, k: (bt, 0, 0)),
        scratch_shapes=[pltpu.VMEM((TB * L, W), jnp.float32)],
        compiler_params=pltpu.CompilerParams(
            dimension_semantics=("parallel", "arbitrary"),
            vmem_limit_bytes=vmem_limit),
    )(lat0, lnx, mod, qw, kw, vw, qb, kb, vb, ow, ob, fcw, fcb, pjw, pjb,
      pow_, pob, pg, pbeta)
    return out_pad[..., :O]


# --------------------------- pure-JAX reference -------------------------------

def _ref_forward(x, temb, params, heads):
    def silu(v):
        return v * jax.nn.sigmoid(v)

    def ln(v, eps):
        mu = jnp.mean(v, axis=-1, keepdims=True)
        var = jnp.mean(jnp.square(v - mu), axis=-1, keepdims=True)
        return (v - mu) / jnp.sqrt(var + eps)

    def ada(v, w, b):
        emb = silu(temb) @ w.T + b                   # (B, 1, 2W)
        Wd = v.shape[-1]
        shift, scale = emb[..., :Wd], emb[..., Wd:]
        return ln(v, 1e-6) * (1.0 + scale) + shift

    lat = params['latents'][None] + (silu(temb) @ params['ta_w'].T + params['ta_b'])
    xp = x @ params['proj_in_w'].T + params['proj_in_b']
    for bp in params['blocks']:
        nl = ada(lat, bp['ln1_w'], bp['ln1_b'])
        nx = ada(xp, bp['ln2_w'], bp['ln2_b'])
        kv = jnp.concatenate([nl, nx], axis=1)
        Wd = lat.shape[-1]
        Dh = Wd // heads
        q = nl @ bp['in_w'][:Wd].T + bp['in_b'][:Wd]
        k = kv @ bp['in_w'][Wd:2 * Wd].T + bp['in_b'][Wd:2 * Wd]
        v = kv @ bp['in_w'][2 * Wd:].T + bp['in_b'][2 * Wd:]
        B, L, _ = q.shape
        M = k.shape[1]
        qh = q.reshape(B, L, heads, Dh).transpose(0, 2, 1, 3)
        kh = k.reshape(B, M, heads, Dh).transpose(0, 2, 1, 3)
        vh = v.reshape(B, M, heads, Dh).transpose(0, 2, 1, 3)
        s = jnp.einsum('bhld,bhmd->bhlm', qh, kh) / jnp.sqrt(float(Dh))
        p = jax.nn.softmax(s, axis=-1)
        o = jnp.einsum('bhlm,bhmd->bhld', p, vh).transpose(0, 2, 1, 3).reshape(B, L, Wd)
        lat = lat + (o @ bp['out_w'].T + bp['out_b'])
        nf = ada(lat, bp['lnff_w'], bp['lnff_b'])
        h1 = nf @ bp['fc_w'].T + bp['fc_b']
        h1 = jnp.square(jnp.maximum(h1, 0.0))
        lat = lat + (h1 @ bp['pj_w'].T + bp['pj_b'])
    y = lat @ params['proj_out_w'].T + params['proj_out_b']
    return ln(y, 1e-5) * params['proj_out_g'] + params['proj_out_beta']


# ------------------------------ param creation --------------------------------

def make_params(key, *, width, num_blocks, num_latents, input_dim, output_dim, T):
    keys = iter(jax.random.split(key, 64))

    def nrm(shape, s=0.05):
        return s * jax.random.normal(next(keys), shape, jnp.float32)

    # NOTE: AdaLayerNorm linears are zero-init in the reference module; here we
    # use small random values so the shift/scale path is actually exercised.
    params = {
        'latents': (width ** -0.5) * jax.random.normal(next(keys), (num_latents, width),
                                                       jnp.float32),
        'ta_w': nrm((width, T)), 'ta_b': nrm((width,)),
        'proj_in_w': nrm((width, input_dim)), 'proj_in_b': nrm((width,)),
        'blocks': [],
        'proj_out_w': nrm((output_dim, width)), 'proj_out_b': nrm((output_dim,)),
        'proj_out_g': jnp.ones((output_dim,), jnp.float32),
        'proj_out_beta': jnp.zeros((output_dim,), jnp.float32),
    }
    for _ in range(num_blocks):
        params['blocks'].append({
            'ln1_w': nrm((2 * width, T)), 'ln1_b': nrm((2 * width,)),
            'ln2_w': nrm((2 * width, T)), 'ln2_b': nrm((2 * width,)),
            'lnff_w': nrm((2 * width, T)), 'lnff_b': nrm((2 * width,)),
            'in_w': nrm((3 * width, width)), 'in_b': nrm((3 * width,)),
            'out_w': nrm((width, width)), 'out_b': nrm((width,)),
            'fc_w': nrm((4 * width, width)), 'fc_b': nrm((4 * width,)),
            'pj_w': nrm((width, 4 * width)), 'pj_b': nrm((width,)),
        })
    return params


# ----------------------------------- main --------------------------------------

if __name__ == "__main__":
    B, S = 2, 8
    input_dim, width, heads = 16, 32, 4
    num_blocks, num_latents, output_dim, T = 2, 8, 24, 32

    key = jax.random.PRNGKey(0)
    kx, kt, kp = jax.random.split(key, 3)
    x = jax.random.normal(kx, (B, S, input_dim), jnp.float32)
    temb = jax.random.normal(kt, (B, 1, T), jnp.float32)
    params = make_params(kp, width=width, num_blocks=num_blocks,
                         num_latents=num_latents, input_dim=input_dim,
                         output_dim=output_dim, T=T)

    fwd = jax.jit(functools.partial(perceiver_resampler_forward, heads=heads))
    out = jax.block_until_ready(fwd(x, temb, params))

    with jax.default_matmul_precision('highest'):
        ref = jax.block_until_ready(_ref_forward(x, temb, params, heads))

    assert out.shape == (B, num_latents, output_dim)
    assert jnp.allclose(out, ref, atol=2e-2, rtol=2e-2), \
        float(jnp.max(jnp.abs(out - ref)))
    print("KERNEL_OK")
</pallas_src>

<mosaic_0001>
module attributes {stable_mosaic.version = 11 : i64} {
  func.func @_fused_kernel(%arg0: i32, %arg1: i32, %arg2: memref<1x8x32xf32, #tpu.memory_space<vmem>>, %arg3: memref<1x8x32xbf16, #tpu.memory_space<vmem>>, %arg4: memref<1x1x6x32xf32, #tpu.memory_space<vmem>>, %arg5: memref<1x32x32xbf16, #tpu.memory_space<vmem>>, %arg6: memref<1x32x32xbf16, #tpu.memory_space<vmem>>, %arg7: memref<1x32x32xbf16, #tpu.memory_space<vmem>>, %arg8: memref<1x1x32xf32, #tpu.memory_space<vmem>>, %arg9: memref<1x1x32xf32, #tpu.memory_space<vmem>>, %arg10: memref<1x1x32xf32, #tpu.memory_space<vmem>>, %arg11: memref<1x32x32xbf16, #tpu.memory_space<vmem>>, %arg12: memref<1x1x32xf32, #tpu.memory_space<vmem>>, %arg13: memref<1x32x128xbf16, #tpu.memory_space<vmem>>, %arg14: memref<1x1x128xf32, #tpu.memory_space<vmem>>, %arg15: memref<1x128x32xbf16, #tpu.memory_space<vmem>>, %arg16: memref<1x1x32xf32, #tpu.memory_space<vmem>>, %arg17: memref<32x128xbf16, #tpu.memory_space<vmem>>, %arg18: memref<1x128xf32, #tpu.memory_space<vmem>>, %arg19: memref<1x128xf32, #tpu.memory_space<vmem>>, %arg20: memref<1x128xf32, #tpu.memory_space<vmem>>, %arg21: memref<1x8x128xf32, #tpu.memory_space<vmem>>, %arg22: memref<8x32xf32, #tpu.memory_space<vmem>>) attributes {dimension_semantics = [#tpu.dimension_semantics<parallel>, #tpu.dimension_semantics<arbitrary>], iteration_bounds = array<i64: 2, 2>, scalar_prefetch = 0 : i64, scratch_operands = 1 : i64, tpu.core_type = #tpu.core_type<tc>, window_params = [{transform_indices = @transform_0, window_bounds = array<i64: 1, 8, 32>}, {transform_indices = @transform_1, window_bounds = array<i64: 1, 8, 32>}, {transform_indices = @transform_2, window_bounds = array<i64: 1, 1, 6, 32>}, {transform_indices = @transform_3, window_bounds = array<i64: 1, 32, 32>}, {transform_indices = @transform_4, window_bounds = array<i64: 1, 32, 32>}, {transform_indices = @transform_5, window_bounds = array<i64: 1, 32, 32>}, {transform_indices = @transform_6, window_bounds = array<i64: 1, 1, 32>}, {transform_indices = @transform_7, window_bounds = array<i64: 1, 1, 32>}, {transform_indices = @transform_8, window_bounds = array<i64: 1, 1, 32>}, {transform_indices = @transform_9, window_bounds = array<i64: 1, 32, 32>}, {transform_indices = @transform_10, window_bounds = array<i64: 1, 1, 32>}, {transform_indices = @transform_11, window_bounds = array<i64: 1, 32, 128>}, {transform_indices = @transform_12, window_bounds = array<i64: 1, 1, 128>}, {transform_indices = @transform_13, window_bounds = array<i64: 1, 128, 32>}, {transform_indices = @transform_14, window_bounds = array<i64: 1, 1, 32>}, {pipeline_mode = #tpu.pipeline_mode<synchronous>, transform_indices = @transform_15, window_bounds = array<i64: 32, 128>}, {pipeline_mode = #tpu.pipeline_mode<synchronous>, transform_indices = @transform_16, window_bounds = array<i64: 1, 128>}, {pipeline_mode = #tpu.pipeline_mode<synchronous>, transform_indices = @transform_17, window_bounds = array<i64: 1, 128>}, {pipeline_mode = #tpu.pipeline_mode<synchronous>, transform_indices = @transform_18, window_bounds = array<i64: 1, 128>}, {transform_indices = @transform_19, window_bounds = array<i64: 1, 8, 128>}]} {
    %c0_i32 = arith.constant 0 : i32
    %0 = arith.cmpi eq, %arg1, %c0_i32 : i32
    %1 = arith.extui %0 : i1 to i32
    %c0_i32_0 = arith.constant 0 : i32
    %2 = arith.cmpi ne, %1, %c0_i32_0 : i32
    scf.if %2 {
      %c0_87 = arith.constant 0 : index
      %c0_88 = arith.constant 0 : index
      %c0_89 = arith.constant 0 : index
      %215 = vector.load %arg2[%c0_87, %c0_88, %c0_89] : memref<1x8x32xf32, #tpu.memory_space<vmem>>, vector<1x8x32xf32>
      %216 = vector.shape_cast %215 : vector<1x8x32xf32> to vector<8x32xf32>
      %c0_90 = arith.constant 0 : index
      %c0_91 = arith.constant 0 : index
      %217 = vector.load %arg22[%c0_90, %c0_91] : memref<8x32xf32, #tpu.memory_space<vmem>>, vector<8x32xf32>
      tpu.vector_store %arg22[%c0_90, %c0_91], %216 {strides = array<i32>} : memref<8x32xf32, #tpu.memory_space<vmem>>, vector<8x32xf32>,
    } else {
    }
    %c0 = arith.constant 0 : index
    %c0_1 = arith.constant 0 : index
    %3 = vector.load %arg22[%c0, %c0_1] : memref<8x32xf32, #tpu.memory_space<vmem>>, vector<8x32xf32>
    %c0_2 = arith.constant 0 : index
    %c0_3 = arith.constant 0 : index
    %c0_4 = arith.constant 0 : index
    %c0_5 = arith.constant 0 : index
    %4 = vector.load %arg4[%c0_2, %c0_3, %c0_4, %c0_5] : memref<1x1x6x32xf32, #tpu.memory_space<vmem>>, vector<1x1x6x32xf32>
    %5 = vector.shape_cast %4 : vector<1x1x6x32xf32> to vector<1x6x32xf32>
    %6 = vector.extract_strided_slice %5 {offsets = [0, 0, 0], sizes = [1, 1, 32], strides = [1, 1, 1]} : vector<1x6x32xf32> to vector<1x1x32xf32>
    %7 = vector.extract_strided_slice %5 {offsets = [0, 1, 0], sizes = [1, 1, 32], strides = [1, 1, 1]} : vector<1x6x32xf32> to vector<1x1x32xf32>
    %8 = vector.extract_strided_slice %5 {offsets = [0, 2, 0], sizes = [1, 1, 32], strides = [1, 1, 1]} : vector<1x6x32xf32> to vector<1x1x32xf32>
    %9 = vector.extract_strided_slice %5 {offsets = [0, 3, 0], sizes = [1, 1, 32], strides = [1, 1, 1]} : vector<1x6x32xf32> to vector<1x1x32xf32>
    %10 = vector.extract_strided_slice %5 {offsets = [0, 4, 0], sizes = [1, 1, 32], strides = [1, 1, 1]} : vector<1x6x32xf32> to vector<1x1x32xf32>
    %11 = vector.extract_strided_slice %5 {offsets = [0, 5, 0], sizes = [1, 1, 32], strides = [1, 1, 1]} : vector<1x6x32xf32> to vector<1x1x32xf32>
    %12 = vector.shape_cast %3 : vector<8x32xf32> to vector<1x8x32xf32>
    %cst = arith.constant dense<0.000000e+00> : vector<1x8xf32>
    %13 = vector.multi_reduction <add>, %12, %cst [2] : vector<1x8x32xf32> to vector<1x8xf32>
    %14 = vector.shape_cast %13 : vector<1x8xf32> to vector<1x8x1xf32>
    %cst_6 = arith.constant 3.200000e+01 : f32
    %15 = vector.broadcast %cst_6 : f32 to vector<1x8x1xf32>
    %16 = arith.divf %14, %15 : vector<1x8x1xf32>
    %17 = vector.broadcast %16 : vector<1x8x1xf32> to vector<1x8x32xf32>
    %18 = arith.subf %12, %17 : vector<1x8x32xf32>
    %19 = arith.mulf %18, %18 : vector<1x8x32xf32>
    %cst_7 = arith.constant dense<0.000000e+00> : vector<1x8xf32>
    %20 = vector.multi_reduction <add>, %19, %cst_7 [2] : vector<1x8x32xf32> to vector<1x8xf32>
    %21 = vector.shape_cast %20 : vector<1x8xf32> to vector<1x8x1xf32>
    %cst_8 = arith.constant 3.200000e+01 : f32
    %22 = vector.broadcast %cst_8 : f32 to vector<1x8x1xf32>
    %23 = arith.divf %21, %22 : vector<1x8x1xf32>
    %cst_9 = arith.constant 9.99999997E-7 : f32
    %24 = vector.broadcast %cst_9 : f32 to vector<1x8x1xf32>
    %25 = arith.addf %23, %24 : vector<1x8x1xf32>
    %26 = math.rsqrt %25 : vector<1x8x1xf32>
    %27 = vector.broadcast %26 : vector<1x8x1xf32> to vector<1x8x32xf32>
    %28 = arith.mulf %18, %27 : vector<1x8x32xf32>
    %cst_10 = arith.constant 1.000000e+00 : f32
    %29 = vector.broadcast %cst_10 : f32 to vector<1x1x32xf32>
    %30 = arith.addf %29, %7 : vector<1x1x32xf32>
    %31 = vector.broadcast %30 : vector<1x1x32xf32> to vector<1x8x32xf32>
    %32 = arith.mulf %28, %31 : vector<1x8x32xf32>
    %33 = vector.broadcast %6 : vector<1x1x32xf32> to vector<1x8x32xf32>
    %34 = arith.addf %32, %33 : vector<1x8x32xf32>
    %c0_11 = arith.constant 0 : index
    %c0_12 = arith.constant 0 : index
    %c0_13 = arith.constant 0 : index
    %35 = vector.load %arg3[%c0_11, %c0_12, %c0_13] : memref<1x8x32xbf16, #tpu.memory_space<vmem>>, vector<1x8x32xbf16>
    %36 = arith.extf %35 : vector<1x8x32xbf16> to vector<1x8x32xf32>
    %cst_14 = arith.constant 1.000000e+00 : f32
    %37 = vector.broadcast %cst_14 : f32 to vector<1x1x32xf32>
    %38 = arith.addf %37, %9 : vector<1x1x32xf32>
    %39 = vector.broadcast %38 : vector<1x1x32xf32> to vector<1x8x32xf32>
    %40 = arith.mulf %36, %39 : vector<1x8x32xf32>
    %41 = vector.broadcast %8 : vector<1x1x32xf32> to vector<1x8x32xf32>
    %42 = arith.addf %40, %41 : vector<1x8x32xf32>
    %43 = tpu.concatenate %34, %42 in 1 : vector<1x8x32xf32>, vector<1x8x32xf32> -> vector<1x16x32xf32>
    %44 = vector.shape_cast %43 : vector<1x16x32xf32> to vector<16x32xf32>
    %45 = arith.truncf %44 : vector<16x32xf32> to vector<16x32xbf16>
    %46 = vector.shape_cast %34 : vector<1x8x32xf32> to vector<8x32xf32>
    %47 = arith.truncf %46 : vector<8x32xf32> to vector<8x32xbf16>
    %c0_15 = arith.constant 0 : index
    %c0_16 = arith.constant 0 : index
    %c0_17 = arith.constant 0 : index
    %48 = vector.load %arg5[%c0_15, %c0_16, %c0_17] : memref<1x32x32xbf16, #tpu.memory_space<vmem>>, vector<1x32x32xbf16>
    %49 = vector.shape_cast %48 : vector<1x32x32xbf16> to vector<32x32xbf16>
    %cst_18 = arith.constant dense<0.000000e+00> : vector<8x32xf32>
    %50 = tpu.matmul %47, %49, %cst_18 {dimension_numbers = #tpu.dot_dimension_numbers<[1], [0], [0], [1], [0, 0, 1, 1], [], []>} : vector<8x32xbf16>, vector<32x32xbf16>, vector<8x32xf32> -> vector<8x32xf32>
    %c0_19 = arith.constant 0 : index
    %c0_20 = arith.constant 0 : index
    %c0_21 = arith.constant 0 : index
    %51 = vector.load %arg8[%c0_19, %c0_20, %c0_21] : memref<1x1x32xf32, #tpu.memory_space<vmem>>, vector<1x1x32xf32>
    %52 = vector.shape_cast %51 : vector<1x1x32xf32> to vector<1x32xf32>
    %53 = vector.broadcast %52 : vector<1x32xf32> to vector<8x32xf32>
    %54 = arith.addf %50, %53 : vector<8x32xf32>
    %c0_22 = arith.constant 0 : index
    %c0_23 = arith.constant 0 : index
    %c0_24 = arith.constant 0 : index
    %55 = vector.load %arg6[%c0_22, %c0_23, %c0_24] : memref<1x32x32xbf16, #tpu.memory_space<vmem>>, vector<1x32x32xbf16>
    %56 = vector.shape_cast %55 : vector<1x32x32xbf16> to vector<32x32xbf16>
    %cst_25 = arith.constant dense<0.000000e+00> : vector<16x32xf32>
    %57 = tpu.matmul %45, %56, %cst_25 {dimension_numbers = #tpu.dot_dimension_numbers<[1], [0], [0], [1], [0, 0, 1, 1], [], []>} : vector<16x32xbf16>, vector<32x32xbf16>, vector<16x32xf32> -> vector<16x32xf32>
    %c0_26 = arith.constant 0 : index
    %c0_27 = arith.constant 0 : index
    %c0_28 = arith.constant 0 : index
    %58 = vector.load %arg9[%c0_26, %c0_27, %c0_28] : memref<1x1x32xf32, #tpu.memory_space<vmem>>, vector<1x1x32xf32>
    %59 = vector.shape_cast %58 : vector<1x1x32xf32> to vector<1x32xf32>
    %60 = vector.broadcast %59 : vector<1x32xf32> to vector<16x32xf32>
    %61 = arith.addf %57, %60 : vector<16x32xf32>
    %c0_29 = arith.constant 0 : index
    %c0_30 = arith.constant 0 : index
    %c0_31 = arith.constant 0 : index
    %62 = vector.load %arg7[%c0_29, %c0_30, %c0_31] : memref<1x32x32xbf16, #tpu.memory_space<vmem>>, vector<1x32x32xbf16>
    %63 = vector.shape_cast %62 : vector<1x32x32xbf16> to vector<32x32xbf16>
    %cst_32 = arith.constant dense<0.000000e+00> : vector<16x32xf32>
    %64 = tpu.matmul %45, %63, %cst_32 {dimension_numbers = #tpu.dot_dimension_numbers<[1], [0], [0], [1], [0, 0, 1, 1], [], []>} : vector<16x32xbf16>, vector<32x32xbf16>, vector<16x32xf32> -> vector<16x32xf32>
    %c0_33 = arith.constant 0 : index
    %c0_34 = arith.constant 0 : index
    %c0_35 = arith.constant 0 : index
    %65 = vector.load %arg10[%c0_33, %c0_34, %c0_35] : memref<1x1x32xf32, #tpu.memory_space<vmem>>, vector<1x1x32xf32>
    %66 = vector.shape_cast %65 : vector<1x1x32xf32> to vector<1x32xf32>
    %67 = vector.broadcast %66 : vector<1x32xf32> to vector<16x32xf32>
    %68 = arith.addf %64, %67 : vector<16x32xf32>
    %69 = vector.shape_cast %54 : vector<8x32xf32> to vector<1x8x32xf32>
    %70 = vector.shape_cast %61 : vector<16x32xf32> to vector<1x16x32xf32>
    %71 = vector.shape_cast %68 : vector<16x32xf32> to vector<1x16x32xf32>
    %72 = vector.extract_strided_slice %69 {offsets = [0, 0, 0], sizes = [1, 8, 8], strides = [1, 1, 1]} : vector<1x8x32xf32> to vector<1x8x8xf32>
    %73 = arith.truncf %72 : vector<1x8x8xf32> to vector<1x8x8xbf16>
    %74 = vector.extract_strided_slice %70 {offsets = [0, 0, 0], sizes = [1, 16, 8], strides = [1, 1, 1]} : vector<1x16x32xf32> to vector<1x16x8xf32>
    %75 = arith.truncf %74 : vector<1x16x8xf32> to vector<1x16x8xbf16>
    %76 = vector.extract_strided_slice %71 {offsets = [0, 0, 0], sizes = [1, 16, 8], strides = [1, 1, 1]} : vector<1x16x32xf32> to vector<1x16x8xf32>
    %77 = arith.truncf %76 : vector<1x16x8xf32> to vector<1x16x8xbf16>
    "tpu.trace_start"() <{level = 10 : i32, message = "bld,bmd->blm"}> : () -> ()
    %cst_36 = arith.constant dense<0.000000e+00> : vector<1x8x16xf32>
    %78 = tpu.matmul %73, %75, %cst_36 {dimension_numbers = #tpu.dot_dimension_numbers<[2], [2], [1], [1], [0, 0, 0, 1, 1, 1], [0], [0]>} : vector<1x8x8xbf16>, vector<1x16x8xbf16>, vector<1x8x16xf32> -> vector<1x8x16xf32>
    "tpu.trace_stop"() : () -> ()
    %cst_37 = arith.constant 0.353553385 : f32
    %79 = vector.broadcast %cst_37 : f32 to vector<1x8x16xf32>
    %80 = arith.mulf %78, %79 : vector<1x8x16xf32>
    %cst_38 = arith.constant dense<0xFF800000> : vector<1x8xf32>
    %81 = vector.multi_reduction <maximumf>, %80, %cst_38 [2] : vector<1x8x16xf32> to vector<1x8xf32>
    %82 = vector.shape_cast %81 : vector<1x8xf32> to vector<1x8x1xf32>
    %83 = vector.broadcast %82 : vector<1x8x1xf32> to vector<1x8x16xf32>
    %84 = arith.subf %80, %83 : vector<1x8x16xf32>
    %85 = math.exp %84 : vector<1x8x16xf32>
    %cst_39 = arith.constant dense<0.000000e+00> : vector<1x8xf32>
    %86 = vector.multi_reduction <add>, %85, %cst_39 [2] : vector<1x8x16xf32> to vector<1x8xf32>
    %87 = vector.shape_cast %86 : vector<1x8xf32> to vector<1x8x1xf32>
    %88 = tpu.reciprocal %87 {approx = true} : vector<1x8x1xf32> -> vector<1x8x1xf32>
    %89 = arith.truncf %85 : vector<1x8x16xf32> to vector<1x8x16xbf16>
    "tpu.trace_start"() <{level = 10 : i32, message = "blm,bmd->bld"}> : () -> ()
    %cst_40 = arith.constant dense<0.000000e+00> : vector<1x8x8xf32>
    %90 = tpu.matmul %89, %77, %cst_40 {dimension_numbers = #tpu.dot_dimension_numbers<[2], [1], [1], [2], [0, 0, 0, 1, 1, 2], [0], [0]>} : vector<1x8x16xbf16>, vector<1x16x8xbf16>, vector<1x8x8xf32> -> vector<1x8x8xf32>
    "tpu.trace_stop"() : () -> ()
    %91 = vector.broadcast %88 : vector<1x8x1xf32> to vector<1x8x8xf32>
    %92 = arith.mulf %90, %91 : vector<1x8x8xf32>
    %93 = vector.extract_strided_slice %69 {offsets = [0, 0, 8], sizes = [1, 8, 8], strides = [1, 1, 1]} : vector<1x8x32xf32> to vector<1x8x8xf32>
    %94 = arith.truncf %93 : vector<1x8x8xf32> to vector<1x8x8xbf16>
    %95 = vector.extract_strided_slice %70 {offsets = [0, 0, 8], sizes = [1, 16, 8], strides = [1, 1, 1]} : vector<1x16x32xf32> to vector<1x16x8xf32>
    %96 = arith.truncf %95 : vector<1x16x8xf32> to vector<1x16x8xbf16>
    %97 = vector.extract_strided_slice %71 {offsets = [0, 0, 8], sizes = [1, 16, 8], strides = [1, 1, 1]} : vector<1x16x32xf32> to vector<1x16x8xf32>
    %98 = arith.truncf %97 : vector<1x16x8xf32> to vector<1x16x8xbf16>
    "tpu.trace_start"() <{level = 10 : i32, message = "bld,bmd->blm"}> : () -> ()
    %cst_41 = arith.constant dense<0.000000e+00> : vector<1x8x16xf32>
    %99 = tpu.matmul %94, %96, %cst_41 {dimension_numbers = #tpu.dot_dimension_numbers<[2], [2], [1], [1], [0, 0, 0, 1, 1, 1], [0], [0]>} : vector<1x8x8xbf16>, vector<1x16x8xbf16>, vector<1x8x16xf32> -> vector<1x8x16xf32>
    "tpu.trace_stop"() : () -> ()
    %cst_42 = arith.constant 0.353553385 : f32
    %100 = vector.broadcast %cst_42 : f32 to vector<1x8x16xf32>
    %101 = arith.mulf %99, %100 : vector<1x8x16xf32>
    %cst_43 = arith.constant dense<0xFF800000> : vector<1x8xf32>
    %102 = vector.multi_reduction <maximumf>, %101, %cst_43 [2] : vector<1x8x16xf32> to vector<1x8xf32>
    %103 = vector.shape_cast %102 : vector<1x8xf32> to vector<1x8x1xf32>
    %104 = vector.broadcast %103 : vector<1x8x1xf32> to vector<1x8x16xf32>
    %105 = arith.subf %101, %104 : vector<1x8x16xf32>
    %106 = math.exp %105 : vector<1x8x16xf32>
    %cst_44 = arith.constant dense<0.000000e+00> : vector<1x8xf32>
    %107 = vector.multi_reduction <add>, %106, %cst_44 [2] : vector<1x8x16xf32> to vector<1x8xf32>
    %108 = vector.shape_cast %107 : vector<1x8xf32> to vector<1x8x1xf32>
    %109 = tpu.reciprocal %108 {approx = true} : vector<1x8x1xf32> -> vector<1x8x1xf32>
    %110 = arith.truncf %106 : vector<1x8x16xf32> to vector<1x8x16xbf16>
    "tpu.trace_start"() <{level = 10 : i32, message = "blm,bmd->bld"}> : () -> ()
    %cst_45 = arith.constant dense<0.000000e+00> : vector<1x8x8xf32>
    %111 = tpu.matmul %110, %98, %cst_45 {dimension_numbers = #tpu.dot_dimension_numbers<[2], [1], [1], [2], [0, 0, 0, 1, 1, 2], [0], [0]>} : vector<1x8x16xbf16>, vector<1x16x8xbf16>, vector<1x8x8xf32> -> vector<1x8x8xf32>
    "tpu.trace_stop"() : () -> ()
    %112 = vector.broadcast %109 : vector<1x8x1xf32> to vector<1x8x8xf32>
    %113 = arith.mulf %111, %112 : vector<1x8x8xf32>
    %114 = vector.extract_strided_slice %69 {offsets = [0, 0, 16], sizes = [1, 8, 8], strides = [1, 1, 1]} : vector<1x8x32xf32> to vector<1x8x8xf32>
    %115 = arith.truncf %114 : vector<1x8x8xf32> to vector<1x8x8xbf16>
    %116 = vector.extract_strided_slice %70 {offsets = [0, 0, 16], sizes = [1, 16, 8], strides = [1, 1, 1]} : vector<1x16x32xf32> to vector<1x16x8xf32>
    %117 = arith.truncf %116 : vector<1x16x8xf32> to vector<1x16x8xbf16>
    %118 = vector.extract_strided_slice %71 {offsets = [0, 0, 16], sizes = [1, 16, 8], strides = [1, 1, 1]} : vector<1x16x32xf32> to vector<1x16x8xf32>
    %119 = arith.truncf %118 : vector<1x16x8xf32> to vector<1x16x8xbf16>
    "tpu.trace_start"() <{level = 10 : i32, message = "bld,bmd->blm"}> : () -> ()
    %cst_46 = arith.constant dense<0.000000e+00> : vector<1x8x16xf32>
    %120 = tpu.matmul %115, %117, %cst_46 {dimension_numbers = #tpu.dot_dimension_numbers<[2], [2], [1], [1], [0, 0, 0, 1, 1, 1], [0], [0]>} : vector<1x8x8xbf16>, vector<1x16x8xbf16>, vector<1x8x16xf32> -> vector<1x8x16xf32>
    "tpu.trace_stop"() : () -> ()
    %cst_47 = arith.constant 0.353553385 : f32
    %121 = vector.broadcast %cst_47 : f32 to vector<1x8x16xf32>
    %122 = arith.mulf %120, %121 : vector<1x8x16xf32>
    %cst_48 = arith.constant dense<0xFF800000> : vector<1x8xf32>
    %123 = vector.multi_reduction <maximumf>, %122, %cst_48 [2] : vector<1x8x16xf32> to vector<1x8xf32>
    %124 = vector.shape_cast %123 : vector<1x8xf32> to vector<1x8x1xf32>
    %125 = vector.broadcast %124 : vector<1x8x1xf32> to vector<1x8x16xf32>
    %126 = arith.subf %122, %125 : vector<1x8x16xf32>
    %127 = math.exp %126 : vector<1x8x16xf32>
    %cst_49 = arith.constant dense<0.000000e+00> : vector<1x8xf32>
    %128 = vector.multi_reduction <add>, %127, %cst_49 [2] : vector<1x8x16xf32> to vector<1x8xf32>
    %129 = vector.shape_cast %128 : vector<1x8xf32> to vector<1x8x1xf32>
    %130 = tpu.reciprocal %129 {approx = true} : vector<1x8x1xf32> -> vector<1x8x1xf32>
    %131 = arith.truncf %127 : vector<1x8x16xf32> to vector<1x8x16xbf16>
    "tpu.trace_start"() <{level = 10 : i32, message = "blm,bmd->bld"}> : () -> ()
    %cst_50 = arith.constant dense<0.000000e+00> : vector<1x8x8xf32>
    %132 = tpu.matmul %131, %119, %cst_50 {dimension_numbers = #tpu.dot_dimension_numbers<[2], [1], [1], [2], [0, 0, 0, 1, 1, 2], [0], [0]>} : vector<1x8x16xbf16>, vector<1x16x8xbf16>, vector<1x8x8xf32> -> vector<1x8x8xf32>
    "tpu.trace_stop"() : () -> ()
    %133 = vector.broadcast %130 : vector<1x8x1xf32> to vector<1x8x8xf32>
    %134 = arith.mulf %132, %133 : vector<1x8x8xf32>
    %135 = vector.extract_strided_slice %69 {offsets = [0, 0, 24], sizes = [1, 8, 8], strides = [1, 1, 1]} : vector<1x8x32xf32> to vector<1x8x8xf32>
    %136 = arith.truncf %135 : vector<1x8x8xf32> to vector<1x8x8xbf16>
    %137 = vector.extract_strided_slice %70 {offsets = [0, 0, 24], sizes = [1, 16, 8], strides = [1, 1, 1]} : vector<1x16x32xf32> to vector<1x16x8xf32>
    %138 = arith.truncf %137 : vector<1x16x8xf32> to vector<1x16x8xbf16>
    %139 = vector.extract_strided_slice %71 {offsets = [0, 0, 24], sizes = [1, 16, 8], strides = [1, 1, 1]} : vector<1x16x32xf32> to vector<1x16x8xf32>
    %140 = arith.truncf %139 : vector<1x16x8xf32> to vector<1x16x8xbf16>
    "tpu.trace_start"() <{level = 10 : i32, message = "bld,bmd->blm"}> : () -> ()
    %cst_51 = arith.constant dense<0.000000e+00> : vector<1x8x16xf32>
    %141 = tpu.matmul %136, %138, %cst_51 {dimension_numbers = #tpu.dot_dimension_numbers<[2], [2], [1], [1], [0, 0, 0, 1, 1, 1], [0], [0]>} : vector<1x8x8xbf16>, vector<1x16x8xbf16>, vector<1x8x16xf32> -> vector<1x8x16xf32>
    "tpu.trace_stop"() : () -> ()
    %cst_52 = arith.constant 0.353553385 : f32
    %142 = vector.broadcast %cst_52 : f32 to vector<1x8x16xf32>
    %143 = arith.mulf %141, %142 : vector<1x8x16xf32>
    %cst_53 = arith.constant dense<0xFF800000> : vector<1x8xf32>
    %144 = vector.multi_reduction <maximumf>, %143, %cst_53 [2] : vector<1x8x16xf32> to vector<1x8xf32>
    %145 = vector.shape_cast %144 : vector<1x8xf32> to vector<1x8x1xf32>
    %146 = vector.broadcast %145 : vector<1x8x1xf32> to vector<1x8x16xf32>
    %147 = arith.subf %143, %146 : vector<1x8x16xf32>
    %148 = math.exp %147 : vector<1x8x16xf32>
    %cst_54 = arith.constant dense<0.000000e+00> : vector<1x8xf32>
    %149 = vector.multi_reduction <add>, %148, %cst_54 [2] : vector<1x8x16xf32> to vector<1x8xf32>
    %150 = vector.shape_cast %149 : vector<1x8xf32> to vector<1x8x1xf32>
    %151 = tpu.reciprocal %150 {approx = true} : vector<1x8x1xf32> -> vector<1x8x1xf32>
    %152 = arith.truncf %148 : vector<1x8x16xf32> to vector<1x8x16xbf16>
    "tpu.trace_start"() <{level = 10 : i32, message = "blm,bmd->bld"}> : () -> ()
    %cst_55 = arith.constant dense<0.000000e+00> : vector<1x8x8xf32>
    %153 = tpu.matmul %152, %140, %cst_55 {dimension_numbers = #tpu.dot_dimension_numbers<[2], [1], [1], [2], [0, 0, 0, 1, 1, 2], [0], [0]>} : vector<1x8x16xbf16>, vector<1x16x8xbf16>, vector<1x8x8xf32> -> vector<1x8x8xf32>
    "tpu.trace_stop"() : () -> ()
    %154 = vector.broadcast %151 : vector<1x8x1xf32> to vector<1x8x8xf32>
    %155 = arith.mulf %153, %154 : vector<1x8x8xf32>
    %156 = tpu.concatenate %92, %113, %134, %155 in 2 : vector<1x8x8xf32>, vector<1x8x8xf32>, vector<1x8x8xf32>, vector<1x8x8xf32> -> vector<1x8x32xf32>
    %157 = vector.shape_cast %156 : vector<1x8x32xf32> to vector<8x32xf32>
    %158 = arith.truncf %157 : vector<8x32xf32> to vector<8x32xbf16>
    %c0_56 = arith.constant 0 : index
    %c0_57 = arith.constant 0 : index
    %c0_58 = arith.constant 0 : index
    %159 = vector.load %arg11[%c0_56, %c0_57, %c0_58] : memref<1x32x32xbf16, #tpu.memory_space<vmem>>, vector<1x32x32xbf16>
    %160 = vector.shape_cast %159 : vector<1x32x32xbf16> to vector<32x32xbf16>
    %cst_59 = arith.constant dense<0.000000e+00> : vector<8x32xf32>
    %161 = tpu.matmul %158, %160, %cst_59 {dimension_numbers = #tpu.dot_dimension_numbers<[1], [0], [0], [1], [0, 0, 1, 1], [], []>} : vector<8x32xbf16>, vector<32x32xbf16>, vector<8x32xf32> -> vector<8x32xf32>
    %c0_60 = arith.constant 0 : index
    %c0_61 = arith.constant 0 : index
    %c0_62 = arith.constant 0 : index
    %162 = vector.load %arg12[%c0_60, %c0_61, %c0_62] : memref<1x1x32xf32, #tpu.memory_space<vmem>>, vector<1x1x32xf32>
    %163 = vector.shape_cast %162 : vector<1x1x32xf32> to vector<1x32xf32>
    %164 = vector.broadcast %163 : vector<1x32xf32> to vector<8x32xf32>
    %165 = arith.addf %161, %164 : vector<8x32xf32>
    %166 = arith.addf %3, %165 : vector<8x32xf32>
    %167 = vector.shape_cast %166 : vector<8x32xf32> to vector<1x8x32xf32>
    %cst_63 = arith.constant dense<0.000000e+00> : vector<1x8xf32>
    %168 = vector.multi_reduction <add>, %167, %cst_63 [2] : vector<1x8x32xf32> to vector<1x8xf32>
    %169 = vector.shape_cast %168 : vector<1x8xf32> to vector<1x8x1xf32>
    %cst_64 = arith.constant 3.200000e+01 : f32
    %170 = vector.broadcast %cst_64 : f32 to vector<1x8x1xf32>
    %171 = arith.divf %169, %170 : vector<1x8x1xf32>
    %172 = vector.broadcast %171 : vector<1x8x1xf32> to vector<1x8x32xf32>
    %173 = arith.subf %167, %172 : vector<1x8x32xf32>
    %174 = arith.mulf %173, %173 : vector<1x8x32xf32>
    %cst_65 = arith.constant dense<0.000000e+00> : vector<1x8xf32>
    %175 = vector.multi_reduction <add>, %174, %cst_65 [2] : vector<1x8x32xf32> to vector<1x8xf32>
    %176 = vector.shape_cast %175 : vector<1x8xf32> to vector<1x8x1xf32>
    %cst_66 = arith.constant 3.200000e+01 : f32
    %177 = vector.broadcast %cst_66 : f32 to vector<1x8x1xf32>
    %178 = arith.divf %176, %177 : vector<1x8x1xf32>
    %cst_67 = arith.constant 9.99999997E-7 : f32
    %179 = vector.broadcast %cst_67 : f32 to vector<1x8x1xf32>
    %180 = arith.addf %178, %179 : vector<1x8x1xf32>
    %181 = math.rsqrt %180 : vector<1x8x1xf32>
    %182 = vector.broadcast %181 : vector<1x8x1xf32> to vector<1x8x32xf32>
    %183 = arith.mulf %173, %182 : vector<1x8x32xf32>
    %cst_68 = arith.constant 1.000000e+00 : f32
    %184 = vector.broadcast %cst_68 : f32 to vector<1x1x32xf32>
    %185 = arith.addf %184, %11 : vector<1x1x32xf32>
    %186 = vector.broadcast %185 : vector<1x1x32xf32> to vector<1x8x32xf32>
    %187 = arith.mulf %183, %186 : vector<1x8x32xf32>
    %188 = vector.broadcast %10 : vector<1x1x32xf32> to vector<1x8x32xf32>
    %189 = arith.addf %187, %188 : vector<1x8x32xf32>
    %190 = vector.shape_cast %189 : vector<1x8x32xf32> to vector<8x32xf32>
    %191 = arith.truncf %190 : vector<8x32xf32> to vector<8x32xbf16>
    %c0_69 = arith.constant 0 : index
    %c0_70 = arith.constant 0 : index
    %c0_71 = arith.constant 0 : index
    %192 = vector.load %arg13[%c0_69, %c0_70, %c0_71] : memref<1x32x128xbf16, #tpu.memory_space<vmem>>, vector<1x32x128xbf16>
    %193 = vector.shape_cast %192 : vector<1x32x128xbf16> to vector<32x128xbf16>
    %cst_72 = arith.constant dense<0.000000e+00> : vector<8x128xf32>
    %194 = tpu.matmul %191, %193, %cst_72 {dimension_numbers = #tpu.dot_dimension_numbers<[1], [0], [0], [1], [0, 0, 1, 1], [], []>} : vector<8x32xbf16>, vector<32x128xbf16>, vector<8x128xf32> -> vector<8x128xf32>
    %c0_73 = arith.constant 0 : index
    %c0_74 = arith.constant 0 : index
    %c0_75 = arith.constant 0 : index
    %195 = vector.load %arg14[%c0_73, %c0_74, %c0_75] : memref<1x1x128xf32, #tpu.memory_space<vmem>>, vector<1x1x128xf32>
    %196 = vector.shape_cast %195 : vector<1x1x128xf32> to vector<1x128xf32>
    %197 = vector.broadcast %196 : vector<1x128xf32> to vector<8x128xf32>
    %198 = arith.addf %194, %197 : vector<8x128xf32>
    %cst_76 = arith.constant 0.000000e+00 : f32
    %199 = vector.broadcast %cst_76 : f32 to vector<8x128xf32>
    %200 = arith.maximumf %198, %199 : vector<8x128xf32>
    %201 = arith.mulf %200, %200 : vector<8x128xf32>
    %202 = arith.truncf %201 : vector<8x128xf32> to vector<8x128xbf16>
    %c0_77 = arith.constant 0 : index
    %c0_78 = arith.constant 0 : index
    %c0_79 = arith.constant 0 : index
    %203 = vector.load %arg15[%c0_77, %c0_78, %c0_79] : memref<1x128x32xbf16, #tpu.memory_space<vmem>>, vector<1x128x32xbf16>
    %204 = vector.shape_cast %203 : vector<1x128x32xbf16> to vector<128x32xbf16>
    %cst_80 = arith.constant dense<0.000000e+00> : vector<8x32xf32>
    %205 = tpu.matmul %202, %204, %cst_80 {dimension_numbers = #tpu.dot_dimension_numbers<[1], [0], [0], [1], [0, 0, 1, 1], [], []>} : vector<8x128xbf16>, vector<128x32xbf16>, vector<8x32xf32> -> vector<8x32xf32>
    %206 = arith.addf %166, %205 : vector<8x32xf32>
    %c0_81 = arith.constant 0 : index
    %c0_82 = arith.constant 0 : index
    %c0_83 = arith.constant 0 : index
    %207 = vector.load %arg16[%c0_81, %c0_82, %c0_83] : memref<1x1x32xf32, #tpu.memory_space<vmem>>, vector<1x1x32xf32>
    %208 = vector.shape_cast %207 : vector<1x1x32xf32> to vector<1x32xf32>
    %209 = vector.broadcast %208 : vector<1x32xf32> to vector<8x32xf32>
    %210 = arith.addf %206, %209 : vector<8x32xf32>
    %c0_84 = arith.constant 0 : index
    %c0_85 = arith.constant 0 : index
    %211 = vector.load %arg22[%c0_84, %c0_85] : memref<8x32xf32, #tpu.memory_space<vmem>>, vector<8x32xf32>
    tpu.vector_store %arg22[%c0_84, %c0_85], %210 {strides = array<i32>} : memref<8x32xf32, #tpu.memory_space<vmem>>, vector<8x32xf32>,
    %c1_i32 = arith.constant 1 : i32
    %212 = arith.cmpi eq, %arg1, %c1_i32 : i32
    %213 = arith.extui %212 : i1 to i32
    %c0_i32_86 = arith.constant 0 : i32
    %214 = arith.cmpi ne, %213, %c0_i32_86 : i32
    scf.if %214 {
      %215 = arith.truncf %210 : vector<8x32xf32> to vector<8x32xbf16>
      %c0_87 = arith.constant 0 : index
      %c0_88 = arith.constant 0 : index
      %216 = vector.load %arg17[%c0_87, %c0_88] : memref<32x128xbf16, #tpu.memory_space<vmem>>, vector<32x128xbf16>
      %cst_89 = arith.constant dense<0.000000e+00> : vector<8x128xf32>
      %217 = tpu.matmul %215, %216, %cst_89 {dimension_numbers = #tpu.dot_dimension_numbers<[1], [0], [0], [1], [0, 0, 1, 1], [], []>} : vector<8x32xbf16>, vector<32x128xbf16>, vector<8x128xf32> -> vector<8x128xf32>
      %c0_90 = arith.constant 0 : index
      %c0_91 = arith.constant 0 : index
      %218 = vector.load %arg18[%c0_90, %c0_91] : memref<1x128xf32, #tpu.memory_space<vmem>>, vector<1x128xf32>
      %219 = vector.broadcast %218 : vector<1x128xf32> to vector<8x128xf32>
      %220 = arith.addf %217, %219 : vector<8x128xf32>
      %221 = tpu.iota {dimensions = array<i32: 1>} : vector<8x128xi32>
      %c24_i32 = arith.constant 24 : i32
      %222 = vector.broadcast %c24_i32 : i32 to vector<8x128xi32>
      %223 = arith.cmpi slt, %221, %222 : vector<8x128xi32>
      %cst_92 = arith.constant 0.000000e+00 : f32
      %224 = vector.broadcast %cst_92 : f32 to vector<8x128xf32>
      %225 = arith.select %223, %220, %224 : vector<8x128xi1>, vector<8x128xf32>
      %cst_93 = arith.constant dense<0.000000e+00> : vector<8xf32>
      %226 = vector.multi_reduction <add>, %225, %cst_93 [1] : vector<8x128xf32> to vector<8xf32>
      %227 = vector.shape_cast %226 : vector<8xf32> to vector<8x1xf32>
      %cst_94 = arith.constant 2.400000e+01 : f32
      %228 = vector.broadcast %cst_94 : f32 to vector<8x1xf32>
      %229 = arith.divf %227, %228 : vector<8x1xf32>
      %230 = vector.broadcast %229 : vector<8x1xf32> to vector<8x128xf32>
      %231 = arith.subf %220, %230 : vector<8x128xf32>
      %cst_95 = arith.constant 0.000000e+00 : f32
      %232 = vector.broadcast %cst_95 : f32 to vector<8x128xf32>
      %233 = arith.select %223, %231, %232 : vector<8x128xi1>, vector<8x128xf32>
      %234 = arith.mulf %233, %233 : vector<8x128xf32>
      %cst_96 = arith.constant dense<0.000000e+00> : vector<8xf32>
      %235 = vector.multi_reduction <add>, %234, %cst_96 [1] : vector<8x128xf32> to vector<8xf32>
      %236 = vector.shape_cast %235 : vector<8xf32> to vector<8x1xf32>
      %cst_97 = arith.constant 2.400000e+01 : f32
      %237 = vector.broadcast %cst_97 : f32 to vector<8x1xf32>
      %238 = arith.divf %236, %237 : vector<8x1xf32>
      %cst_98 = arith.constant 9.99999974E-6 : f32
      %239 = vector.broadcast %cst_98 : f32 to vector<8x1xf32>
      %240 = arith.addf %238, %239 : vector<8x1xf32>
      %241 = math.rsqrt %240 : vector<8x1xf32>
      %242 = vector.broadcast %241 : vector<8x1xf32> to vector<8x128xf32>
      %243 = arith.mulf %233, %242 : vector<8x128xf32>
      %c0_99 = arith.constant 0 : index
      %c0_100 = arith.constant 0 : index
      %244 = vector.load %arg19[%c0_99, %c0_100] : memref<1x128xf32, #tpu.memory_space<vmem>>, vector<1x128xf32>
      %245 = vector.broadcast %244 : vector<1x128xf32> to vector<8x128xf32>
      %246 = arith.mulf %243, %245 : vector<8x128xf32>
      %c0_101 = arith.constant 0 : index
      %c0_102 = arith.constant 0 : index
      %247 = vector.load %arg20[%c0_101, %c0_102] : memref<1x128xf32, #tpu.memory_space<vmem>>, vector<1x128xf32>
      %248 = vector.broadcast %247 : vector<1x128xf32> to vector<8x128xf32>
      %249 = arith.addf %246, %248 : vector<8x128xf32>
      %250 = vector.shape_cast %249 : vector<8x128xf32> to vector<1x8x128xf32>
      %c0_103 = arith.constant 0 : index
      %c0_104 = arith.constant 0 : index
      %c0_105 = arith.constant 0 : index
      %251 = vector.load %arg21[%c0_103, %c0_104, %c0_105] : memref<1x8x128xf32, #tpu.memory_space<vmem>>, vector<1x8x128xf32>
      tpu.vector_store %arg21[%c0_103, %c0_104, %c0_105], %250 {strides = array<i32>} : memref<1x8x128xf32, #tpu.memory_space<vmem>>, vector<1x8x128xf32>,
    } else {
    }
    return
  }
  func.func @transform_0(%arg0: i32, %arg1: i32) -> (i32, i32, i32) {
    %c0_i32 = arith.constant 0 : i32
    %c0_i32_0 = arith.constant 0 : i32
    %c0_i32_1 = arith.constant 0 : i32
    return %arg0, %c0_i32, %c0_i32_0 : i32, i32, i32
  }
  func.func @transform_1(%arg0: i32, %arg1: i32) -> (i32, i32, i32) {
    %c0_i32 = arith.constant 0 : i32
    %c0_i32_0 = arith.constant 0 : i32
    %c0_i32_1 = arith.constant 0 : i32
    return %arg0, %c0_i32, %c0_i32_0 : i32, i32, i32
  }
  func.func @transform_2(%arg0: i32, %arg1: i32) -> (i32, i32, i32, i32) {
    %c0_i32 = arith.constant 0 : i32
    %c0_i32_0 = arith.constant 0 : i32
    %c0_i32_1 = arith.constant 0 : i32
    return %arg1, %arg0, %c0_i32, %c0_i32_0 : i32, i32, i32, i32
  }
  func.func @transform_3(%arg0: i32, %arg1: i32) -> (i32, i32, i32) {
    %c0_i32 = arith.constant 0 : i32
    %c0_i32_0 = arith.constant 0 : i32
    %c0_i32_1 = arith.constant 0 : i32
    return %arg1, %c0_i32, %c0_i32_0 : i32, i32, i32
  }
  func.func @transform_4(%arg0: i32, %arg1: i32) -> (i32, i32, i32) {
    %c0_i32 = arith.constant 0 : i32
    %c0_i32_0 = arith.constant 0 : i32
    %c0_i32_1 = arith.constant 0 : i32
    return %arg1, %c0_i32, %c0_i32_0 : i32, i32, i32
  }
  func.func @transform_5(%arg0: i32, %arg1: i32) -> (i32, i32, i32) {
    %c0_i32 = arith.constant 0 : i32
    %c0_i32_0 = arith.constant 0 : i32
    %c0_i32_1 = arith.constant 0 : i32
    return %arg1, %c0_i32, %c0_i32_0 : i32, i32, i32
  }
  func.func @transform_6(%arg0: i32, %arg1: i32) -> (i32, i32, i32) {
    %c0_i32 = arith.constant 0 : i32
    %c0_i32_0 = arith.constant 0 : i32
    %c0_i32_1 = arith.constant 0 : i32
    return %arg1, %c0_i32, %c0_i32_0 : i32, i32, i32
  }
  func.func @transform_7(%arg0: i32, %arg1: i32) -> (i32, i32, i32) {
    %c0_i32 = arith.constant 0 : i32
    %c0_i32_0 = arith.constant 0 : i32
    %c0_i32_1 = arith.constant 0 : i32
    return %arg1, %c0_i32, %c0_i32_0 : i32, i32, i32
  }
  func.func @transform_8(%arg0: i32, %arg1: i32) -> (i32, i32, i32) {
    %c0_i32 = arith.constant 0 : i32
    %c0_i32_0 = arith.constant 0 : i32
    %c0_i32_1 = arith.constant 0 : i32
    return %arg1, %c0_i32, %c0_i32_0 : i32, i32, i32
  }
  func.func @transform_9(%arg0: i32, %arg1: i32) -> (i32, i32, i32) {
    %c0_i32 = arith.constant 0 : i32
    %c0_i32_0 = arith.constant 0 : i32
    %c0_i32_1 = arith.constant 0 : i32
    return %arg1, %c0_i32, %c0_i32_0 : i32, i32, i32
  }
  func.func @transform_10(%arg0: i32, %arg1: i32) -> (i32, i32, i32) {
    %c0_i32 = arith.constant 0 : i32
    %c0_i32_0 = arith.constant 0 : i32
    %c0_i32_1 = arith.constant 0 : i32
    return %arg1, %c0_i32, %c0_i32_0 : i32, i32, i32
  }
  func.func @transform_11(%arg0: i32, %arg1: i32) -> (i32, i32, i32) {
    %c0_i32 = arith.constant 0 : i32
    %c0_i32_0 = arith.constant 0 : i32
    %c0_i32_1 = arith.constant 0 : i32
    return %arg1, %c0_i32, %c0_i32_0 : i32, i32, i32
  }
  func.func @transform_12(%arg0: i32, %arg1: i32) -> (i32, i32, i32) {
    %c0_i32 = arith.constant 0 : i32
    %c0_i32_0 = arith.constant 0 : i32
    %c0_i32_1 = arith.constant 0 : i32
    return %arg1, %c0_i32, %c0_i32_0 : i32, i32, i32
  }
  func.func @transform_13(%arg0: i32, %arg1: i32) -> (i32, i32, i32) {
    %c0_i32 = arith.constant 0 : i32
    %c0_i32_0 = arith.constant 0 : i32
    %c0_i32_1 = arith.constant 0 : i32
    return %arg1, %c0_i32, %c0_i32_0 : i32, i32, i32
  }
  func.func @transform_14(%arg0: i32, %arg1: i32) -> (i32, i32, i32) {
    %c0_i32 = arith.constant 0 : i32
    %c0_i32_0 = arith.constant 0 : i32
    %c0_i32_1 = arith.constant 0 : i32
    return %arg1, %c0_i32, %c0_i32_0 : i32, i32, i32
  }
  func.func @transform_15(%arg0: i32, %arg1: i32) -> (i32, i32) {
    %c0_i32 = arith.constant 0 : i32
    %c0_i32_0 = arith.constant 0 : i32
    %c0_i32_1 = arith.constant 0 : i32
    return %c0_i32, %c0_i32_0 : i32, i32
  }
  func.func @transform_16(%arg0: i32, %arg1: i32) -> (i32, i32) {
    %c0_i32 = arith.constant 0 : i32
    %c0_i32_0 = arith.constant 0 : i32
    %c0_i32_1 = arith.constant 0 : i32
    return %c0_i32, %c0_i32_0 : i32, i32
  }
  func.func @transform_17(%arg0: i32, %arg1: i32) -> (i32, i32) {
    %c0_i32 = arith.constant 0 : i32
    %c0_i32_0 = arith.constant 0 : i32
    %c0_i32_1 = arith.constant 0 : i32
    return %c0_i32, %c0_i32_0 : i32, i32
  }
  func.func @transform_18(%arg0: i32, %arg1: i32) -> (i32, i32) {
    %c0_i32 = arith.constant 0 : i32
    %c0_i32_0 = arith.constant 0 : i32
    %c0_i32_1 = arith.constant 0 : i32
    return %c0_i32, %c0_i32_0 : i32, i32
  }
  func.func @transform_19(%arg0: i32, %arg1: i32) -> (i32, i32, i32) {
    %c0_i32 = arith.constant 0 : i32
    %c0_i32_0 = arith.constant 0 : i32
    %c0_i32_1 = arith.constant 0 : i32
    return %arg0, %c0_i32, %c0_i32_0 : i32, i32, i32
  }
}

</mosaic_0001>

<bundles_post_ra>
// kernel: perceiver_resampler_forward.1
= control target key start
LH: loop header
LB: loop body
LE: loop exit
PB: predicated region body
PF: predicated region fallthrough
CT: control target
= control target key end

     0   :  { %s2581_s0 = inlined_call_operand.vmem [shape: f32[2,8,32], index: 0, kind: input, shape index: {}]   ;;  %s2582_s1 = inlined_call_operand.vmem [shape: bf16[2,8,32], index: 1, kind: input, shape index: {}]   ;;  %s2583_s2 = inlined_call_operand.vmem [shape: f32[2,2,6,32], index: 2, kind: input, shape index: {}]   ;;  %s2584_s3 = inlined_call_operand.vmem [shape: bf16[2,32,32], index: 3, kind: input, shape index: {}]   ;;  %s2585_s4 = inlined_call_operand.vmem [shape: bf16[2,32,32], index: 4, kind: input, shape index: {}]   ;;  %s2586_s5 = inlined_call_operand.vmem [shape: bf16[2,32,32], index: 5, kind: input, shape index: {}]   ;;  %s2587_s6 = inlined_call_operand.vmem [shape: f32[2,1,32], index: 6, kind: input, shape index: {}]   ;;  %s2588_s7 = inlined_call_operand.vmem [shape: f32[2,1,32], index: 7, kind: input, shape index: {}]   ;;  %s2589_s8 = inlined_call_operand.vmem [shape: f32[2,1,32], index: 8, kind: input, shape index: {}]   ;;  %s2590_s9 = inlined_call_operand.vmem [shape: bf16[2,32,32], index: 9, kind: input, shape index: {}]   ;;  %s2591_s10 = inlined_call_operand.vmem [shape: f32[2,1,32], index: 10, kind: input, shape index: {}]   ;;  %s2592_s11 = inlined_call_operand.vmem [shape: bf16[2,32,128], index: 11, kind: input, shape index: {}]   ;;  %s2593_s12 = inlined_call_operand.vmem [shape: f32[2,1,128], index: 12, kind: input, shape index: {}]   ;;  %s2594_s13 = inlined_call_operand.vmem [shape: bf16[2,128,32], index: 13, kind: input, shape index: {}]   ;;  %s2595_s14 = inlined_call_operand.vmem [shape: f32[2,1,32], index: 14, kind: input, shape index: {}]   ;;  %s2596_s15 = inlined_call_operand.vmem [shape: bf16[32,128], index: 15, kind: input, shape index: {}]   ;;  %s2597_s16 = inlined_call_operand.vmem [shape: f32[1,128], index: 16, kind: input, shape index: {}]   ;;  %s2598_s17 = inlined_call_operand.vmem [shape: f32[1,128], index: 17, kind: input, shape index: {}]   ;;  %s2599_s18 = inlined_call_operand.vmem [shape: f32[1,128], index: 18, kind: input, shape index: {}]   ;;  %s2600_s19 = inlined_call_operand.hbm [shape: f32[2,8,128], index: 19, kind: output, shape index: {}]  }
   0x1   :  { %2618 = sst [smem:[#allocation21_spill]] %s2581_s0 }
   0x2   :  { %2619 = sst [smem:[#allocation22_spill]] %s2582_s1 }
   0x3   :  { %2620 = sst [smem:[#allocation23_spill]] %s2583_s2 }
   0x4   :  { %2621 = sst [smem:[#allocation24_spill]] %s2584_s3 }
   0x5   :  { %2622 = sst [smem:[#allocation25_spill]] %s2585_s4 }
   0x6   :  { %2623 = sst [smem:[#allocation26_spill]] %s2586_s5 }
   0x7   :  { %2624 = sst [smem:[#allocation27_spill]] %s2590_s9 }
   0x8   :  { %2625 = sst [smem:[#allocation28_spill]] %s2595_s14 }
   0x9   :  { %2626 = sst [smem:[#allocation29_spill]] %s2596_s15 }
   0xa   :  { %2627 = sst [smem:[#allocation30_spill]] %s2597_s16 }
   0xb   :  { %2628 = sst [smem:[#allocation31_spill]] %s2598_s17 }
   0xc   :  { %2629 = sst [smem:[#allocation32_spill]] %s2599_s18 }
   0xd   :  { %2630 = sst [smem:[#allocation33_spill]] %s2600_s19 }
   0xe   :  { %24 = vsyncpa [#allocation4], 0 }
   0xf   :  { %26 = vsyncpa [#allocation4 + $0x1], 0  ;;  %s2252_s0 = smov 0   ;;  %s2254_s30 = smov 0  }
  0x10   :  { %s2256_s20 = smov 0   ;;  %s2258_s21 = smov 0  }
  0x11   :  { %s2260_s1 = smov 0   ;;  %s2262_s22 = smov 0  }
  0x12   :  { %s2264_s2 = smov 0   ;;  %s2266_s23 = smov 0  }
  0x13 LB: > { %2631 = sst [smem:[#allocation6_spill]] %s2114_s0  ;;  %s1786_s24 = sadd.s32 4294967295, %s2142_s23   ;;  %s2142_s23 = sphi %s2266_s23, %s32_s23   ;;  %s2138_s2 = sphi %s2264_s2, %s2683_s2   ;;  %s2134_s22 = sphi %s2262_s22, %s2682_s22   ;;  %s2130_s1 = sphi %s2260_s1, %s2681_s1   ;;  %s2126_s21 = sphi %s2258_s21, %s2680_s21   ;;  %s2122_s20 = sphi %s2256_s20, %s2679_s20   ;;  %s2118_s30 = sphi %s2254_s30, %s2678_s30   ;;  %s2114_s0 = sphi %s2252_s0, %s2677_s0  }
  0x14   : > { %2632 = sst [smem:[#allocation7_spill]] %s2118_s30  ;;  %s1787_s25 = sadd.s32 4294967294, %s2142_s23  }
  0x15   : > { %2633 = sst [smem:[#allocation8_spill]] %s2122_s20  ;;  %s41_s3 = sadd.s32 1, %s2134_s22 }
  0x16   : > { %2634 = sst [smem:[#allocation9_spill]] %s2126_s21  ;;  %p42_p0 = scmp.ge.s32.totalorder %s41_s3, 2 }
  0x17   : > { %2635 = sst [smem:[#allocation10_spill]] %s2130_s1  ;;  %s44_s26 = sadd.s32 1, %s2138_s2 }
  0x18   : > { %2636 = sst [smem:[#allocation11_spill]] %s2134_s22  ;;  %p537_p1 = scmp.ne.s32.totalorder %s2122_s20, %s2118_s30 }
  0x19   : > { %2637 = sst [smem:[#allocation12_spill]] %s2138_s2  ;;  %p538_p2 = scmp.eq.s32.totalorder %s1786_s24, 3 }
  0x1a   : > { %2638 = sst [smem:[#allocation13_spill]] %s2142_s23  ;;  %s2685_s3 = smov (%p42_p0, %s41_s3), 0 }
  0x1b   : > { %2639 = sst [smem:[#allocation14_spill]] %s2685_s3  ;;  %s2687_s26 = smov (!%p42_p0, %s44_s26), %s2138_s2 }
  0x1c   : > { %p2301_p3 = por %p538_p2, %p537_p1  ;;  %p543_p4 = scmp.ne.s32.totalorder %s2118_s30, %s2114_s0 }
  0x1d   : > { %p46_p5 = scmp.ge.s32.totalorder %s2687_s26, 2  ;;  %p544_p6 = scmp.eq.s32.totalorder %s1787_s25, 3 }
  0x1e   : > { %s2640_s27 = scalar_select %p2301_p3, 1, 0 }
  0x1f   : > { %p1790_p7 = scmp.ge.s32.totalorder %s2142_s23, 1  ;;  %p683_p8 = scmp.lt.s32.totalorder %s2142_s23, 5 }
  0x20   : > { %2641 = sst [smem:[#allocation15_spill]] %s2640_s27  ;;  %s2689_s26 = smov (%p46_p5, %s2687_s26), 0 }
  0x21   : > { %2642 = sst [smem:[#allocation16_spill]] %s2689_s26  ;;  %p2311_p9 = por %p544_p6, %p543_p4 }
  0x22   : > { %p684_p10 = pnand %p1790_p7, %p683_p8  ;;  %s524_s29 = ssub.s32 %s2138_s2, %s2689_s26 }
  0x23   : > { %s2643_s28 = scalar_select %p2311_p9, 1, 0 }
  0x24   : > { %s527_s24 = sadd.s32 1, %s2122_s20  ;;  %p525_p11 = scmp.eq.s32.totalorder %s524_s29, 0 }
  0x25   : > { %2644 = sst [smem:[#allocation17_spill]] %s2643_s28  ;;  %687 = sbr.rel (%p684_p10) target bundleno = 2251 (0x8cb), region = 96 }
  0x26   : > { %s2319_s3 = scalar_select %p525_p11, %s2122_s20, %s527_s24  }
  0x28   : > { %2645 = sst [smem:[#allocation18_spill]] %s2319_s3 }
  0x2a   : > { %s2610_s25 = sand.u32 1, %s2118_s30   ;;  %p798_p12 = scmp.lt.s32.totalorder %s2130_s1, 1 }
  0x2b   : > { %s2325_s22 = sshll.u32 %s2610_s25, 3  ;;  %p806_p13 = scmp.lt.s32.totalorder %s2126_s21, 1 }
  0x2c   : > { %s799_s28 = scalar_select %p798_p12, %s2130_s1, 1 }
  0x2d   : > { %s2330_s0 = scalar_select %p806_p13, %s2126_s21, 1 }
  0x2e   : > { %s1792_s29 = sshll.u32 %s799_s28, 3  ;;  %s1793_s24 = sshll.u32 %s799_s28, 2 }
  0x2f   : > { %s2646_s3 = sld [smem:[#allocation21_spill]]  ;;  %s1794_s30 = sshll.u32 %s2330_s0, 1 }
  0x30   : > { %s2647_s25 = sld [smem:[#allocation22_spill]]  ;;  %s1908_s1 = sshll.u32 %s2330_s0, 4 }
  0x31   : > { %s811_s18 = sadd.s32 %s1794_s30, %s799_s28  ;;  %s2649_s15 = sld [smem:[#allocation24_spill]] }
  0x32   : > { %s1795_s14 = sshll.u32 %s811_s18, 3  ;;  %s2650_s4 = sld [smem:[#allocation25_spill]] }
  0x33   : > { %s2653_s5 = sld [smem:[#allocation26_spill]]  ;;  %s2386_s17 = scalar_lea.vmem %s2592_s11, %s1908_s1 }
  0x34   : > { %s2654_s9 = sld [smem:[#allocation27_spill]]  ;;  %s853_s2 = scalar_lea.vmem %s2593_s12, %s2330_s0 }
  0x35   : > { %s801_s20 = scalar_lea.vmem %s2646_s3, %s1792_s29 }
  0x36   : > { %s2338_s27 = scalar_lea.vmem %s2647_s25, %s1793_s24  ;;  %s2652_s25 = sld [smem:[#allocation23_spill]] }
  0x37   : > { %2648 = sst [smem:[#allocation19_spill]] %s2338_s27  ;;  %s2345_s21 = scalar_lea.vmem %s2649_s15, %s1908_s1 }
  0x38   : > { %s2350_s26 = scalar_lea.vmem %s2650_s4, %s1908_s1  ;;  %s1913_s4 = sshll.u32 %s2330_s0, 6 }
  0x39   : > { %2651 = sst [smem:[#allocation20_spill]] %s2350_s26  ;;  %s2360_s30 = scalar_lea.vmem %s2653_s5, %s1908_s1 }
  0x3a   : > { %s2377_s23 = scalar_lea.vmem %s2654_s9, %s1908_s1  ;;  %s2396_s19 = scalar_lea.vmem %s2594_s13, %s1913_s4 }
  0x3b   : > { %s2655_s9 = sld [smem:[#allocation28_spill]] }
  0x3c   : > { %s2355_s29 = scalar_lea.vmem %s2652_s25, %s1795_s14  ;;  %s797_s25 = scalar_lea.vmem [#allocation3], %s2325_s22 }
  0x3d   : > { %s2656_s24 = sld [smem:[#allocation9_spill]] }
  0x41   : > { %s861_s27 = scalar_lea.vmem %s2655_s9, %s2330_s0 }
  0x43   : > { %p1808_p0 = scmp.ne.s32.totalorder %s2656_s24, 0 }
  0x45   : > { %866 = sbr.rel (%p1808_p0) target bundleno = 76 (0x4c), region = 100 }
  0x4a   : > { %v867_v0 = vld [vmem:[%s801_s20] sm:$0xff]  ;;  %vm868_vm0 = vcmask 261120  }
  0x4b   : > { %869 = vst.msk [vmem:[#allocation2] sm:$0xff] %vm868_vm0, %v867_v0 }
  0x4c PF: > { %vm872_vm1 = vcmask 261120   ;;  %v2144_v3 = vmov 32.0   ;;  %s2657_s5 = sld [smem:[#allocation20_spill]]  ;;  %v1915_v15 = vld [vmem:[%s2345_s21 + $0x8] sm:$0xff]  ;;  %v1914_v17 = vld [vmem:[%s2345_s21] sm:$0xff]  ;;  %s2659_s1 = scalar_lea.vmem %s2587_s6, %s2330_s0  ;;  %vm1032_vm6 = vcmask 64512  }
  0x4d   : > { %2019 = vrcp.f32 %v2144_v3  ;;  %944 = vmatpush.bf16.msra.mxu0 %v1915_v15  ;;  %s2658_s9 = sld [smem:[#allocation19_spill]]  ;;  %v1919_v19 = vld [vmem:[%s2360_s30 + $0x8] sm:$0xff]  ;;  %v1918_v22 = vld [vmem:[%s2360_s30] sm:$0xff]  ;;  %s2660_s30 = scalar_lea.vmem %s2588_s7, %s2330_s0  ;;  %vm1053_vm7 = vcmask 130048   ;;  %vm1270_vm8 = vcmask 195584  }
  0x4e   : > { %v2421_v24 = vld [vmem:[%s2355_s29] sm:$0x3f]  ;;  %s2145_s15 = smov 112   ;;  %s2661_s18 = scalar_lea.vmem %s2589_s8, %s2330_s0 }
  0x4f   : > { %v2424_v27 = vadd.f32 1.0, %v2421_v24  ;;  %v911_v37 = vperm.slane %v2421_v24, 2  ;;  %v905_v40 = vperm.slane %v2421_v24, 0  ;;  %v2013_v46 = vld [vmem:[%s2659_s1] ss:$0 sm:$0xff]  ;;  %s2146_s28 = smov 120   ;;  %s2662_s20 = scalar_lea.vmem %s2591_s10, %s2330_s0 }
  0x50   : > { %v2014_v53 = vld [vmem:[%s2660_s30] ss:$0 sm:$0xff]  ;;  %s2147_s4 = smov 104   ;;  %s2148_s3 = smov 8  }
  0x51   : > { %945 = vmatpush.bf16.msra.mxu0 %v1914_v17  ;;  %v909_v32 = vperm.slane %v2424_v27, 3  ;;  %v903_v35 = vperm.slane %v2424_v27, 1  ;;  %v2015_v0 = vld [vmem:[%s2661_s18] ss:$0 sm:$0xff]  ;;  %s2149_s14 = smov 16  }
  0x52   : > { %v2404_v1 = vld [vmem:[#allocation2] sm:$0xff]  ;;  %v1917_v16 = vld [vmem:[%s2657_s5 + $0x8] sm:$0xff] }
  0x53   : > { %v873_v2 = vsel %vm872_vm1, %v2404_v1, 0.0  ;;  %v2020_v4 = vpop.eup %2019  ;;  %980 = vmatpush.bf16.msra.mxu2 %v1917_v16  ;;  %v1916_v18 = vld [vmem:[%s2657_s5] sm:$0xff]  ;;  %s2150_s5 = smov 24  }
  0x54   : > { %874 = vadd.xlane.f32.xlu0 %v873_v2  ;;  %v877_v5 = vmul.f32 32.0, %v2020_v4  ;;  %vm881_vm2 = vweird.f32 %v2020_v4  ;;  %v907_v29 = vld [vmem:[%s2658_s9] sm:$0xf] }
  0x55   : > { %v908_v31 = vunpack.c.l.bf16 %v907_v29 }
  0x56   : > { %v878_v6 = vsub.f32 1.0, %v877_v5 }
  0x57   : > { %981 = vmatpush.bf16.msra.mxu2 %v1916_v18  ;;  %v910_v36 = vmul.f32 %v909_v32, %v908_v31 }
  0x58   : > { %v879_v7 = vmul.f32 %v2020_v4, %v878_v6 }
  0x59   : > { %v912_v42 = vadd.f32 %v911_v37, %v910_v36 }
  0x5a   : > { %v880_v8 = vadd.f32 %v2020_v4, %v879_v7 }
  0x5b   : > { %1014 = vmatpush.bf16.msrb.mxu2 %v1919_v19 }
  0x5c   : > { %v2408_v9 = vsel %vm881_vm2, %v2020_v4, %v880_v8 }
  0x5f   : > { %1015 = vmatpush.bf16.msrb.mxu2 %v1918_v22 }
  0xc7   : > { %v875_v10 = vpop.xlane.xlu0 %874 }
  0xc8   : > { %v883_v11 = vmul.f32 %v2408_v9, %v875_v10 }
  0xca   : > { %v884_v12 = vsub.f32 %v2404_v1, %v883_v11 }
  0xcc   : > { %v885_v13 = vmul.f32 %v884_v12, %v884_v12 }
  0xce   : > { %v886_v14 = vsel %vm872_vm1, %v885_v13, 0.0 }
  0xcf   : > { %887 = vadd.xlane.f32.xlu0 %v886_v14 }
 0x142   : > { %v888_v20 = vpop.xlane.xlu0 %887 }
 0x143   : > { %v889_v21 = vmul.f32 %v888_v20, %v2408_v9 }
 0x145   : > { %v890_v23 = vadd.f32 1e-06, %v889_v21 }
 0x147   : > { %2021 = vrsqrt.f32 %v890_v23  ;;  %vm897_vm4 = vweird.f32 %v890_v23 }
 0x14d   : > { %v2022_v25 = vpop.eup %2021 }
 0x14e   : > { %v892_v26 = vmul.f32 %v2022_v25, %v890_v23  ;;  %vm898_vm3 = vweird.f32 %v2022_v25 }
 0x14f   : > { %vm899_vm5 = vmor %vm897_vm4, %vm898_vm3 }
 0x150   : > { %v893_v28 = vmul.f32 %v2022_v25, %v892_v26 }
 0x152   : > { %v894_v30 = vmul.f32 0.5, %v893_v28 }
 0x154   : > { %v895_v33 = vsub.f32 1.5, %v894_v30 }
 0x156   : > { %v896_v34 = vmul.f32 %v2022_v25, %v895_v33 }
 0x158   : > { %v900_v38 = vsel %vm899_vm5, %v2022_v25, %v896_v34 }
 0x159   : > { %v901_v39 = vmul.f32 %v900_v38, %v884_v12 }
 0x15b   : > { %v904_v41 = vmul.f32 %v903_v35, %v901_v39 }
 0x15d   : > { %v906_v43 = vadd.f32 %v905_v40, %v904_v41 }
 0x15f   : > { %v914_v44 = vpack.c.bf16 %v906_v43, %v906_v43  ;;  %v913_v45 = vpack.c.bf16 %v912_v42, %v906_v43 }
 0x161   : > { %1817 = vmatmul.msk.bf16.vlgmr.msra.gmra.mxu0 %vm872_vm1, %v914_v44  ;;  %1826 = vmatmul.msk.bf16.vlgmr.msra.gmra.mxu2 %vm872_vm1, %v913_v45 }
 0x171   : > { %1835 = vmatmul.msk.bf16.vlgmr.msrb.gmra.mxu2 %vm872_vm1, %v913_v45 }
 0x1de   : > { %v947_v47 = vpop.f32.mrf.mxu0 }
 0x1df   : > { %v948_v48 = vadd.f32 %v2013_v46, %v947_v47 }
 0x1e1   : > { %v1022_v49 = vpack.c.bf16 %v948_v48, %v948_v48 }
 0x1e3   : > { %v1089_v50 = vunpack.c.l.b16 %v1022_v49 }
 0x1e4   : > { %v983_v51 = vpop.f32.mrf.mxu2 }
 0x1e5   : > { %v1090_v52 = vpack.c.b16 %v1089_v50, %v1089_v50  ;;  %v984_v55 = vadd.f32 %v2014_v53, %v983_v51 }
 0x1e6   : > { %v949_v54 = vpop.f32.mrf.mxu0 }
 0x1e7   : > { %1146 = vrot.lane.b32.xlu0 %v1090_v52, %s2145_s15  ;;  %v1023_v57 = vpack.c.bf16 %v984_v55, %v984_v55 }
 0x1e9   : > { %v1029_v60 = vunpack.c.l.b16 %v1023_v57 }
 0x1ec   : > { %v985_v56 = vpop.f32.mrf.mxu2 }
 0x1ed   : > { %v986_v58 = vadd.f32 %v2014_v53, %v985_v56 }
 0x1ef   : > { %v1024_v59 = vpack.c.bf16 %v986_v58, %v986_v58 }
 0x1f1   : > { %v1030_v61 = vunpack.c.l.b16 %v1024_v59 }
 0x1f3   : > { %v1031_v62 = vpack.c.b16 %v1030_v61, %v1029_v60 }
 0x1f4   : > { %v1017_v63 = vpop.f32.mrf.mxu2 }
 0x1f5   : > { %1148 = vrot.lane.b32.xlu2 %v1031_v62, %s2145_s15  ;;  %1093 = vrot.lane.b32.xlu1 %v1031_v62, %s2146_s28  ;;  %v1037_v2 = vsel %vm1032_vm6, %v1031_v62, 0  ;;  %v1018_v3 = vadd.f32 %v2015_v0, %v1017_v63 }
 0x1f6   : > { %1046 = vmatpush.bf16.xpose.msra.mxu3 %v1037_v2 }
 0x1f7   : > { %v1025_v5 = vpack.c.bf16 %v1018_v3, %v1018_v3 }
 0x1f9   : > { %v1067_v8 = vunpack.c.l.b16 %v1025_v5 }
 0x1fc   : > { %v1019_v4 = vpop.f32.mrf.mxu2 }
 0x1fd   : > { %v1020_v6 = vadd.f32 %v2015_v0, %v1019_v4  ;;  %1203 = vrot.lane.b32.xlu2 %v1031_v62, %s2147_s4  ;;  %1091 = vrot.lane.b32.xlu1 %v1090_v52, %s2146_s28 }
 0x1fe   : > { %1836 = vmatmul.msk.bf16.vlgmr.msra.gmra.mxu3 %vm1032_vm6, %v1022_v49 }
 0x1ff   : > { %v1026_v7 = vpack.c.bf16 %v1020_v6, %v1020_v6 }
 0x201   : > { %v1068_v10 = vunpack.c.l.b16 %v1026_v7 }
 0x203   : > { %v1069_v11 = vpack.c.b16 %v1068_v10, %v1067_v8 }
 0x205   : > { %1126 = vrot.lane.b32.xlu0 %v1069_v11, %s2146_s28  ;;  %1081 = vmatpush.bf16.msrb.mxu0 %v1069_v11 }
 0x206   : > { %1201 = vrot.lane.b32.xlu1 %v1090_v52, %s2147_s4 }
 0x24f   : > { %v1149_v12 = vpop.permute.xlu2 %1148 }
 0x250   : > { %v1154_v13 = vsel %vm1032_vm6, %v1149_v12, 0 }
 0x251   : > { %1163 = vmatpush.bf16.xpose.msrb.mxu3 %v1154_v13 }
 0x257   : > { %v1204_v15 = vpop.permute.xlu2 %1203 }
 0x258   : > { %v1209_v18 = vsel %vm1032_vm6, %v1204_v15, 0 }
 0x259   : > { %v1147_v14 = vpop.permute.xlu0 %1146 }
 0x25a   : > { %1840 = vmatmul.msk.bf16.vlgmr.msrb.gmra.mxu3 %vm1032_vm6, %v1147_v14 }
 0x267   : > { %v1094_v16 = vpop.permute.xlu1 %1093 }
 0x268   : > { %v1099_v17 = vsel %vm1032_vm6, %v1094_v16, 0 }
 0x269   : > { %1108 = vmatpush.bf16.xpose.msra.mxu1 %v1099_v17 }
 0x26f   : > { %v1092_v19 = vpop.permute.xlu1 %1091 }
 0x270   : > { %1838 = vmatmul.msk.bf16.vlgmr.msra.gmra.mxu1 %vm1032_vm6, %v1092_v19 }
 0x271   : > { %1218 = vmatpush.bf16.xpose.msrb.mxu1 %v1209_v18 }
 0x277   : > { %v1127_v20 = vpop.permute.xlu0 %1126 }
 0x278   : > { %1139 = vmatpush.bf16.msra.mxu2 %v1127_v20  ;;  %v1202_v21 = vpop.permute.xlu1 %1201 }
 0x280   : > { %1842 = vmatmul.msk.bf16.vlgmr.msrb.gmra.mxu1 %vm1032_vm6, %v1202_v21  ;;  %v1921_v21 = vld [vmem:[%s2377_s23 + $0x8] sm:$0xff] }
 0x281   : > { %v1048_v22 = vpop.f32.mrf.mxu3  ;;  %1302 = vmatpush.bf16.msra.mxu3 %v1921_v21 }
 0x282   : > { %v1052_v23 = vmul.f32 0.35355338, %v1048_v22  ;;  %v1920_v22 = vld [vmem:[%s2377_s23] sm:$0xff] }
 0x284   : > { %v1054_v25 = vsel %vm1053_vm7, %v1052_v23, -inf }
 0x285   : > { %1055 = vmax.xlane.f32.xlu1 %v1054_v25  ;;  %1303 = vmatpush.bf16.msra.mxu3 %v1920_v22 }
 0x289   : > { %v1050_v26 = vpop.f32.mrf.mxu3 }
 0x29e   : > { %1181 = vrot.lane.b32.xlu1 %v1069_v11, %s2145_s15 }
 0x2dd   : > { %v1165_v28 = vpop.f32.mrf.mxu3 }
 0x2de   : > { %v1169_v33 = vmul.f32 0.35355338, %v1165_v28 }
 0x2e0   : > { %v1170_v36 = vsel %vm1053_vm7, %v1169_v33, -inf }
 0x2e5   : > { %v1167_v29 = vpop.f32.mrf.mxu3 }
 0x2ed   : > { %v1110_v30 = vpop.f32.mrf.mxu1 }
 0x2ee   : > { %v1114_v31 = vmul.f32 0.35355338, %v1110_v30 }
 0x2f0   : > { %v1115_v32 = vsel %vm1053_vm7, %v1114_v31, -inf }
 0x2f1   : > { %1116 = vmax.xlane.f32.xlu2 %v1115_v32 }
 0x2f5   : > { %v1112_v34 = vpop.f32.mrf.mxu1 }
 0x2f8   : > { %v1056_v35 = vpop.xlane.xlu1 %1055 }
 0x2f9   : > { %v1057_v37 = vsub.f32 %v1052_v23, %v1056_v35  ;;  %1171 = vmax.xlane.f32.xlu2 %v1170_v36  ;;  %v2016_v35 = vld [vmem:[%s2662_s20] ss:$0 sm:$0xff] }
 0x2fb   : > { %v1058_v38 = vmul.f32 1.442695, %v1057_v37 }
 0x2fd   : > { %2023 = vpow2.f32 %v1058_v38  ;;  %v1220_v39 = vpop.f32.mrf.mxu1 }
 0x2fe   : > { %v1224_v40 = vmul.f32 0.35355338, %v1220_v39 }
 0x300   : > { %v1225_v41 = vsel %vm1053_vm7, %v1224_v40, -inf }
 0x301   : > { %1226 = vmax.xlane.f32.xlu0 %v1225_v41 }
 0x303   : > { %v2024_v42 = vpop.eup %2023 }
 0x304   : > { %v1064_v43 = vpack.c.bf16 %v2024_v42, %v2024_v42  ;;  %v1060_v61 = vsel %vm1053_vm7, %v2024_v42, 0.0 }
 0x305   : > { %v1222_v44 = vpop.f32.mrf.mxu1 }
 0x306   : > { %1837 = vmatmul.msk.bf16.vlgmr.msrb.gmra.mxu0 %vm1053_vm7, %v1064_v43 }
 0x310   : > { %v1182_v45 = vpop.permute.xlu1 %1181 }
 0x311   : > { %1194 = vmatpush.bf16.msra.mxu0 %v1182_v45  ;;  %1236 = vrot.lane.b32.xlu2 %v1069_v11, %s2147_s4 }
 0x364   : > { %v1117_v46 = vpop.xlane.xlu2 %1116 }
 0x365   : > { %v1118_v47 = vsub.f32 %v1114_v31, %v1117_v46  ;;  %v1923_v46 = vld [vmem:[%s2386_s17 + $0x8] sm:$0xff] }
 0x366   : > { %1366 = vmatpush.bf16.msrb.mxu0 %v1923_v46 }
 0x367   : > { %v1119_v48 = vmul.f32 1.442695, %v1118_v47  ;;  %v1922_v47 = vld [vmem:[%s2386_s17] sm:$0xff] }
 0x369   : > { %2025 = vpow2.f32 %v1119_v48 }
 0x36a   : > { %1367 = vmatpush.bf16.msrb.mxu0 %v1922_v47 }
 0x36c   : > { %v1172_v49 = vpop.xlane.xlu2 %1171 }
 0x36d   : > { %v1173_v50 = vsub.f32 %v1169_v33, %v1172_v49 }
 0x36f   : > { %v2026_v51 = vpop.eup %2025  ;;  %v1174_v52 = vmul.f32 1.442695, %v1173_v50  ;;  %v1930_v50 = vld [vmem:[%s2396_s19 + $0x30] sm:$0xff] }
 0x370   : > { %v1125_v53 = vpack.c.bf16 %v2026_v51, %v2026_v51  ;;  %v1121_v54 = vsel %vm1053_vm7, %v2026_v51, 0.0 }
 0x371   : > { %2027 = vpow2.f32 %v1174_v52  ;;  %1122 = vadd.xlane.f32.xlu0 %v1121_v54  ;;  %v1929_v52 = vld [vmem:[%s2396_s19 + $0x28] sm:$0xff] }
 0x372   : > { %1839 = vmatmul.msk.bf16.vlgmr.msra.gmra.mxu2 %vm1053_vm7, %v1125_v53  ;;  %v1928_v53 = vld [vmem:[%s2396_s19 + $0x20] sm:$0xff] }
 0x374   : > { %v1227_v55 = vpop.xlane.xlu0 %1226  ;;  %v1237_v56 = vpop.permute.xlu2 %1236 }
 0x375   : > { %v1228_v57 = vsub.f32 %v1224_v40, %v1227_v55  ;;  %1249 = vmatpush.bf16.msrb.mxu2 %v1237_v56  ;;  %v1927_v56 = vld [vmem:[%s2396_s19 + $0x18] sm:$0xff] }
 0x377   : > { %v2028_v58 = vpop.eup %2027  ;;  %v1229_v59 = vmul.f32 1.442695, %v1228_v57 }
 0x378   : > { %v1180_v60 = vpack.c.bf16 %v2028_v58, %v2028_v58  ;;  %v1176_v62 = vsel %vm1053_vm7, %v2028_v58, 0.0 }
 0x379   : > { %2029 = vpow2.f32 %v1229_v59  ;;  %1061 = vadd.xlane.f32.xlu0 %v1060_v61  ;;  %1177 = vadd.xlane.f32.xlu2 %v1176_v62  ;;  %v1926_v59 = vld [vmem:[%s2396_s19 + $0x10] sm:$0xff]  ;;  %v1332_v61 = vperm.slane %v2424_v27, 5  ;;  %v2017_v27 = vld [vmem:[%s853_s2] ss:$0 sm:$0xff] }
 0x37a   : > { %1841 = vmatmul.msk.bf16.vlgmr.msra.gmra.mxu0 %vm1053_vm7, %v1180_v60 }
 0x37f   : > { %v2030_v63 = vpop.eup %2029 }
 0x380   : > { %v1235_v0 = vpack.c.bf16 %v2030_v63, %v2030_v63  ;;  %v1231_v2 = vsel %vm1053_vm7, %v2030_v63, 0.0 }
 0x381   : > { %1232 = vadd.xlane.f32.xlu1 %v1231_v2 }
 0x382   : > { %1843 = vmatmul.msk.bf16.vlgmr.msrb.gmra.mxu2 %vm1053_vm7, %v1235_v0  ;;  %v1334_v0 = vperm.slane %v2421_v24, 4 }
 0x383   : > { %v1083_v3 = vpop.f32.mrf.mxu0 }
 0x38b   : > { %v1085_v4 = vpop.f32.mrf.mxu0 }
 0x3e4   : > { %v1123_v5 = vpop.xlane.xlu0 %1122 }
 0x3e5   : > { %2031 = vrcp.f32 %v1123_v5  ;;  %v1925_v5 = vld [vmem:[%s2396_s19 + $0x8] sm:$0xff] }
 0x3eb   : > { %v2032_v7 = vpop.eup %2031 }
 0x3ec   : > { %v1178_v6 = vpop.xlane.xlu2 %1177  ;;  %v1062_v23 = vpop.xlane.xlu0 %1061 }
 0x3ed   : > { %2033 = vrcp.f32 %v1178_v6  ;;  %v1924_v6 = vld [vmem:[%s2396_s19] sm:$0xff] }
 0x3f3   : > { %v2034_v13 = vpop.eup %2033 }
 0x3f4   : > { %v1233_v12 = vpop.xlane.xlu1 %1232 }
 0x3f5   : > { %v1141_v8 = vpop.f32.mrf.mxu2  ;;  %2035 = vrcp.f32 %v1233_v12 }
 0x3f6   : > { %v1145_v10 = vmul.f32 %v2032_v7, %v1141_v8  ;;  %2037 = vrcp.f32 %v1062_v23 }
 0x3f7   : > { %v1196_v11 = vpop.f32.mrf.mxu0 }
 0x3f8   : > { %1257 = vrot.lane.b32.xlu0 %v1145_v10, %s2148_s3  ;;  %v1200_v15 = vmul.f32 %v2034_v13, %v1196_v11  ;;  %v2018_v13 = vld [vmem:[%s861_s27] ss:$0 sm:$0xff] }
 0x3fb   : > { %v2036_v17 = vpop.eup %2035 }
 0x3fc   : > { %v2038_v28 = vpop.eup %2037 }
 0x3fd   : > { %v1143_v14 = vpop.f32.mrf.mxu2  ;;  %v1087_v29 = vmul.f32 %v2038_v28, %v1083_v3 }
 0x3ff   : > { %v1198_v16 = vpop.f32.mrf.mxu0 }
 0x400   : > { %1261 = vrot.lane.b32.xlu0 %v1200_v15, %s2149_s14 }
 0x405   : > { %v1251_v18 = vpop.f32.mrf.mxu2 }
 0x406   : > { %v1255_v19 = vmul.f32 %v2036_v17, %v1251_v18 }
 0x408   : > { %1265 = vrot.lane.b32.xlu0 %v1255_v19, %s2150_s5 }
 0x40d   : > { %v1253_v20 = vpop.f32.mrf.mxu2 }
 0x46a   : > { %v1258_v25 = vpop.permute.xlu0 %1257 }
 0x46b   : > { %v1268_v30 = vsel %vm1032_vm6, %v1087_v29, %v1258_v25 }
 0x472   : > { %v1262_v26 = vpop.permute.xlu0 %1261 }
 0x473   : > { %v1269_v31 = vsel %vm1053_vm7, %v1268_v30, %v1262_v26 }
 0x47a   : > { %v1266_v32 = vpop.permute.xlu0 %1265 }
 0x47b   : > { %v1271_v33 = vsel %vm1270_vm8, %v1269_v31, %v1266_v32 }
 0x47c   : > { %v1272_v34 = vpack.c.bf16 %v1271_v33, %v1271_v33 }
 0x47e   : > { %1852 = vmatmul.msk.bf16.vlgmr.msra.gmra.mxu3 %vm872_vm1, %v1272_v34 }
 0x501   : > { %v1305_v36 = vpop.f32.mrf.mxu3 }
 0x502   : > { %v1306_v37 = vadd.f32 %v2016_v35, %v1305_v36 }
 0x504   : > { %v1309_v38 = vadd.f32 %v1306_v37, %v2404_v1  ;;  %v1931_v1 = vld [vmem:[%s2396_s19 + $0x38] sm:$0xff]  ;;  %s2664_s19 = sld [smem:[#allocation9_spill]] }
 0x505   : > { %1440 = vmatpush.bf16.msra.mxu1 %v1931_v1 }
 0x506   : > { %v1310_v39 = vsel %vm872_vm1, %v1309_v38, 0.0 }
 0x507   : > { %1311 = vadd.xlane.f32.xlu2 %v1310_v39 }
 0x509   : > { %v1307_v40 = vpop.f32.mrf.mxu3  ;;  %1441 = vmatpush.bf16.msra.mxu1 %v1930_v50 }
 0x50a   : > { %p1894_p1 = scmp.ne.s32.totalorder %s2664_s19, 1 }
 0x50b   : > { %s2665_s15 = sld [smem:[#allocation29_spill]] (!%p1894_p1) }
 0x50c   : > { %s2666_s18 = sld [smem:[#allocation30_spill]] (!%p1894_p1) }
 0x50d   : > { %1442 = vmatpush.bf16.msra.mxu1 %v1929_v52  ;;  %s2667_s3 = sld [smem:[#allocation31_spill]] (!%p1894_p1) }
 0x50e   : > { %s2668_s9 = sld [smem:[#allocation32_spill]] (!%p1894_p1) }
 0x511   : > { %1443 = vmatpush.bf16.msra.mxu1 %v1928_v53 }
 0x515   : > { %1444 = vmatpush.bf16.msra.mxu1 %v1927_v56 }
 0x519   : > { %1445 = vmatpush.bf16.msra.mxu1 %v1926_v59 }
 0x51d   : > { %1446 = vmatpush.bf16.msra.mxu1 %v1925_v5 }
 0x521   : > { %1447 = vmatpush.bf16.msra.mxu1 %v1924_v6 }
 0x57a   : > { %v1312_v41 = vpop.xlane.xlu2 %1311 }
 0x57b   : > { %v1313_v42 = vmul.f32 %v1312_v41, %v2408_v9 }
 0x57d   : > { %v1314_v43 = vsub.f32 %v1309_v38, %v1313_v42 }
 0x57f   : > { %v1315_v44 = vmul.f32 %v1314_v43, %v1314_v43 }
 0x581   : > { %v1316_v45 = vsel %vm872_vm1, %v1315_v44, 0.0 }
 0x582   : > { %1317 = vadd.xlane.f32.xlu1 %v1316_v45 }
 0x5f5   : > { %v1318_v48 = vpop.xlane.xlu1 %1317 }
 0x5f6   : > { %v1319_v49 = vmul.f32 %v1318_v48, %v2408_v9 }
 0x5f8   : > { %v1320_v51 = vadd.f32 1e-06, %v1319_v49 }
 0x5fa   : > { %2039 = vrsqrt.f32 %v1320_v51  ;;  %vm1327_vm10 = vweird.f32 %v1320_v51 }
 0x600   : > { %v2040_v54 = vpop.eup %2039 }
 0x601   : > { %v1322_v55 = vmul.f32 %v2040_v54, %v1320_v51  ;;  %vm1328_vm9 = vweird.f32 %v2040_v54 }
 0x602   : > { %vm1329_vm11 = vmor %vm1327_vm10, %vm1328_vm9 }
 0x603   : > { %v1323_v57 = vmul.f32 %v2040_v54, %v1322_v55 }
 0x605   : > { %v1324_v58 = vmul.f32 0.5, %v1323_v57 }
 0x607   : > { %v1325_v60 = vsub.f32 1.5, %v1324_v58 }
 0x609   : > { %v1326_v9 = vmul.f32 %v2040_v54, %v1325_v60 }
 0x60b   : > { %v1330_v62 = vsel %vm1329_vm11, %v2040_v54, %v1326_v9 }
 0x60c   : > { %v1331_v63 = vmul.f32 %v1330_v62, %v1314_v43 }
 0x60e   : > { %v1333_v2 = vmul.f32 %v1332_v61, %v1331_v63 }
 0x610   : > { %v1335_v3 = vadd.f32 %v1334_v0, %v1333_v2 }
 0x612   : > { %v1336_v4 = vpack.c.bf16 %v1335_v3, %v1335_v3 }
 0x614   : > { %1861 = vmatmul.msk.bf16.vlgmr.msrb.gmra.mxu0 %vm872_vm1, %v1336_v4 }
 0x691   : > { %v1369_v7 = vpop.f32.mrf.mxu0 }
 0x692   : > { %v1370_v8 = vadd.f32 %v2017_v27, %v1369_v7 }
 0x694   : > { %v1373_v10 = vmax.f32 %v1370_v8, 0.0 }
 0x696   : > { %v1374_v11 = vmul.f32 %v1373_v10, %v1373_v10 }
 0x698   : > { %v1375_v24 = vpack.c.bf16 %v1374_v11, %v1374_v11 }
 0x699   : > { %v1371_v12 = vpop.f32.mrf.mxu0 }
 0x69a   : > { %1448 = vmatmul.bf16.vlgmr.msra.gmra.mxu1 %v1375_v24 }
 0x717   : > { %v1449_v14 = vpop.f32.mrf.mxu1 }
 0x718   : > { %v1453_v15 = vadd.f32 %v1449_v14, %v1309_v38 }
 0x71a   : > { %v1458_v16 = vadd.f32 %v2018_v13, %v1453_v15 }
 0x71b   : > { %1463 = sbr.rel (%p1894_p1) target bundleno = 2229 (0x8b5), region = 104 }
 0x71c   : > { %1459 = vst.msk [vmem:[#allocation2] sm:$0xff] %vm872_vm1, %v1458_v16 }
 0x71f   : > { %v1451_v17 = vpop.f32.mrf.mxu1 }
 0x720   : > { %v1933_v18 = vld [vmem:[%s2665_s15 + $0x8] sm:$0xff]  ;;  %v1932_v19 = vld [vmem:[%s2665_s15] sm:$0xff]  ;;  %v1464_v20 = vpack.c.bf16 %v1458_v16, %v1458_v16  ;;  %v1501_v21 = vlaneseq  ;;  %v2151_v30 = vmov 24.0  }
 0x721   : > { %1494 = vmatpush.bf16.msra.mxu0 %v1933_v18  ;;  %v2041_v23 = vld [vmem:[%s2666_s18] ss:$0 sm:$0xff]  ;;  %2044 = vrcp.f32 %v2151_v30 }
 0x722   : > { %v1502_v22 = vand.u32 127, %v1501_v21  ;;  %v2042_v50 = vld [vmem:[%s2667_s3] ss:$0 sm:$0xff] }
 0x723   : > { %v2043_v52 = vld [vmem:[%s2668_s9] ss:$0 sm:$0xff] }
 0x724   : > { %vm1503_vm12 = vcmp.lt.s32.totalorder %v1502_v22, 24 }
 0x725   : > { %1495 = vmatpush.bf16.msra.mxu0 %v1932_v19 }
 0x727   : > { %v2045_v31 = vpop.eup %2044 }
 0x728   : > { %1903 = vmatmul.msk.bf16.vlgmr.msra.gmra.mxu0 %vm872_vm1, %v1464_v20  ;;  %v1508_v32 = vmul.f32 24.0, %v2045_v31  ;;  %vm1512_vm13 = vweird.f32 %v2045_v31 }
 0x72a   : > { %v1509_v33 = vsub.f32 1.0, %v1508_v32 }
 0x72c   : > { %v1510_v34 = vmul.f32 %v2045_v31, %v1509_v33 }
 0x72e   : > { %v1511_v35 = vadd.f32 %v2045_v31, %v1510_v34 }
 0x730   : > { %v1513_v36 = vsel %vm1512_vm13, %v2045_v31, %v1511_v35 }
 0x7a5   : > { %v1497_v25 = vpop.f32.mrf.mxu0 }
 0x7a6   : > { %v1498_v26 = vadd.f32 %v2041_v23, %v1497_v25 }
 0x7a8   : > { %v1504_v28 = vsel %vm1503_vm12, %v1498_v26, 0.0 }
 0x7a9   : > { %1505 = vadd.xlane.f32.xlu0 %v1504_v28 }
 0x7ad   : > { %v1499_v29 = vpop.f32.mrf.mxu0 }
 0x81c   : > { %v1506_v37 = vpop.xlane.xlu0 %1505 }
 0x81d   : > { %v1514_v38 = vmul.f32 %v1513_v36, %v1506_v37 }
 0x81f   : > { %v1515_v39 = vsub.f32 %v1498_v26, %v1514_v38 }
 0x821   : > { %v1516_v40 = vsel %vm1503_vm12, %v1515_v39, 0.0 }
 0x822   : > { %v1517_v41 = vmul.f32 %v1516_v40, %v1516_v40 }
 0x824   : > { %1518 = vadd.xlane.f32.xlu0 %v1517_v41 }
 0x897   : > { %v1519_v42 = vpop.xlane.xlu0 %1518 }
 0x898   : > { %v1520_v43 = vmul.f32 %v1519_v42, %v1513_v36 }
 0x89a   : > { %v1521_v44 = vadd.f32 1e-05, %v1520_v43 }
 0x89c   : > { %2046 = vrsqrt.f32 %v1521_v44  ;;  %vm1528_vm15 = vweird.f32 %v1521_v44 }
 0x8a2   : > { %v2047_v45 = vpop.eup %2046 }
 0x8a3   : > { %v1523_v46 = vmul.f32 %v2047_v45, %v1521_v44  ;;  %vm1529_vm14 = vweird.f32 %v2047_v45 }
 0x8a4   : > { %vm1530_vm0 = vmor %vm1528_vm15, %vm1529_vm14 }
 0x8a5   : > { %v1524_v47 = vmul.f32 %v2047_v45, %v1523_v46 }
 0x8a7   : > { %v1525_v1 = vmul.f32 0.5, %v1524_v47 }
 0x8a9   : > { %v1526_v48 = vsub.f32 1.5, %v1525_v1 }
 0x8ab   : > { %v1527_v49 = vmul.f32 %v2047_v45, %v1526_v48 }
 0x8ad   : > { %v1531_v51 = vsel %vm1530_vm0, %v2047_v45, %v1527_v49 }
 0x8ae   : > { %v1532_v53 = vmul.f32 %v1531_v51, %v1516_v40 }
 0x8b0   : > { %v1537_v54 = vmul.f32 %v2042_v50, %v1532_v53 }
 0x8b2   : > { %v1542_v55 = vadd.f32 %v2043_v52, %v1537_v54 }
 0x8b4   : > { %1543 = vst [vmem:[%s797_s25] sm:$0xff] %v1542_v55 }
 0x8b5 PF: > { %s2669_s23 = sld [smem:[#allocation10_spill]]  ;;  %s1557_s2 = sshll.u32 %s797_s25, 4  ;;  %s1558_s2 = int_to_ptr.vmem [resolvable:$true] %s1557_s2 }
 0x8b6   : > { %s2670_s20 = sld [smem:[#allocation7_spill]] }
 0x8b7   : > { %s2672_s29 = sld [smem:[#allocation33_spill]] }
 0x8bb   : > { %s1905_s21 = sshll.u32 %s2669_s23, 3 }
 0x8bc   : > { %s2673_s24 = sand.u32 1, %s2670_s20  }
 0x8bd   : > { %s1555_s19 = scalar_lea.hbm %s2672_s29, %s1905_s21  ;;  %s1545_s16 = scalar_lea.sflag [#allocation4], %s2673_s24 }
 0x8be   : > { %s1559_s30 = sshll.u32 %s1555_s19, 4  ;;  %s2068_s4 = scalar_lea.hbm %s2672_s29, 16  ;;  %s1560_s30 = int_to_ptr.hbm [resolvable:$true] %s1559_s30 }
 0x8bf   : > { %s2062_s0 = sshra.s32 %s1560_s30, 4  ;;  %s2063_s0 = int_to_ptr.hbm [resolvable:$true] %s2062_s0 }
 0x8c0   : > { %s2064_s27 = scalar_lea.hbm %s2063_s0, 8  ;;  %p2069_p6 = scmp.lt.s32.totalorder %s2063_s0, %s2672_s29 }
 0x8c1   : > { %p2065_p2 = scmp.ne.s32.totalorder %s2063_s0, %s2064_s27  ;;  %p2070_p7 = scmp.lt.s32.totalorder %s2068_s4, %s2064_s27 }
 0x8c3   : > { %p2066_p4 = pnand %p2065_p2, %p2301_p3  ;;  %p2071_p8 = por %p2070_p7, %p2069_p6 }
 0x8c5   : > { %p2067_p5 = pneg %p2066_p4 }
 0x8c7   : > { %p2072_p10 = pnand %p2071_p8, %p2067_p5 }
 0x8c9   : > { %2075 = shalt.err (!%p2072_p10)
}
 0x8ca   : > { %1934 = dma.vmem_to_hbm [thread:$0]  (%p2301_p3), %s1558_s2, 128, %s1560_s30, %s1545_s16  }
 0x8cb PF: > { %s2674_s22 = sld [smem:[#allocation13_spill]] }
 0x8cc   : > { %s2675_s25 = sld [smem:[#allocation6_spill]] }
 0x8d1   : > { %p1940_p11 = scmp.ge.s32.totalorder %s2674_s22, 2 }
 0x8d2   : > { %s1571_s9 = sand.u32 1, %s2675_s25  }
 0x8d3   : > { %p1937_p12 = pnand %p1940_p11, %p2311_p9  ;;  %s1572_s23 = scalar_lea.sflag [#allocation4], %s1571_s9 }
 0x8d5   : > { %p1938_p13 = pneg %p1937_p12 }
 0x8d7   : > { %2109 = dma.done.wait (%p1938_p13), %s1572_s23, 128  }
 0x8d8   : > { %2111 = vsyncadd (%p1938_p13), %s1572_s23, 4294967168  ;;  %s32_s23 = sadd.s32 1, %s2674_s22   ;;  %s2677_s0 = sld [smem:[#allocation7_spill]] }
 0x8d9   : > { %p29_p0 = scmp.ge.s32.totalorder %s32_s23, 6   ;;  %s2678_s30 = sld [smem:[#allocation8_spill]] }
 0x8da   : > { %s2679_s20 = sld [smem:[#allocation18_spill]] }
 0x8db   : > { %s2680_s21 = sld [smem:[#allocation11_spill]]  ;;  %31 = sbr.rel (!%p29_p0) target bundleno = 19 (0x13), region = 181 }
 0x8dc   : > { %s2681_s1 = sld [smem:[#allocation12_spill]] }
 0x8dd   : > { %s2682_s22 = sld [smem:[#allocation14_spill]] }
 0x8de   : > { %s2683_s2 = sld [smem:[#allocation16_spill]] }
 0x8e0   :  { %1578 = vsyncpa [#allocation4], 1 }
 0x8e1   :  { %1580 = vsyncpa [#allocation4 + $0x1], 1 }

</bundles_post_ra>
